<compile_context>
chip_gen: v6e
topology: v6e:2x2x1
jax: 0.10.0
libtpu: 0.0.40
codegen_flags: <defaults>
</compile_context>

<pallas_src>
import jax
import jax.numpy as jnp
from jax import lax
from jax.experimental import pallas as pl
from jax.experimental.pallas import tpu as pltpu

LEAKY_SLOPE = 0.01   # torch.nn.LeakyReLU default
BN_EPS = 1e-5        # torch.nn.BatchNorm default


def _leaky(x):
    return jnp.where(x >= 0, x, LEAKY_SLOPE * x)


# ----------------------------------------------------------------------------
# Host-side parameter preparation (pure XLA, tiny, one-time per call)
# ----------------------------------------------------------------------------
def _fold_bn(p):
    scale = p["gamma"] / jnp.sqrt(p["var"] + BN_EPS)
    shift = (p["b"] - p["mean"]) * scale + p["beta"]
    return scale, shift


def _banded_conv_mat(w, scale, W):
    """3x3 'same' conv as ONE K-fused banded matrix (BN scale folded in).

    Returns (3*W*Cin, W*Cout) bf16 with the dy=0,1,2 bands stacked along K so
    out[r] = [act[r-1] | act[r] | act[r+1]] @ M  (zero taps at image edges);
    horizontal 'same' padding is encoded in the band.
    """
    _, _, Cin, Cout = w.shape
    w = w * scale[None, None, None, :]
    wi = jnp.arange(W)[:, None]            # w_in
    wo = jnp.arange(W)[None, :]            # w_out
    dx = wi - wo + 1
    valid = (dx >= 0) & (dx <= 2)
    dxc = jnp.clip(dx, 0, 2)
    mats = []
    for dy in range(3):
        m = w[dy][dxc]                                        # (W, W, Cin, Cout)
        m = jnp.where(valid[:, :, None, None], m, 0.0)
        m = jnp.transpose(m, (0, 2, 1, 3)).reshape(W * Cin, W * Cout)
        mats.append(m)
    return jnp.concatenate(mats, axis=0).astype(jnp.bfloat16)  # (3*W*Cin, W*Cout)


def _pool_even_selector(W, C):
    """Explicit 0/1 selector picking even-w lane blocks: (W*C, (W//2)*C)."""
    rows = jnp.arange(W * C)
    cols = jnp.arange((W // 2) * C)
    rw, rc = rows // C, rows % C
    cw, cc = cols // C, cols % C
    sel = (rw[:, None] == 2 * cw[None, :]) & (rc[:, None] == cc[None, :])
    return sel.astype(jnp.bfloat16)


def _permute_first_dense(w, C, Hf, Wf):
    """Reorder (C*Hf*Wf, Fout) rows from torch NCHW-flatten order to (h, w, c)."""
    Fout = w.shape[1]
    return jnp.transpose(w.reshape(C, Hf, Wf, Fout), (1, 2, 0, 3)).reshape(Hf * Wf * C, Fout)


def _full_spec(shape):
    shape = tuple(int(s) for s in shape)
    zeros = (0,) * len(shape)
    return pl.BlockSpec(shape, lambda i: zeros)


# ----------------------------------------------------------------------------
# Fused encoder forward (single pallas_call, batch-blocked grid)
# ----------------------------------------------------------------------------
def conv_encoder_forward(x_nchw, params, *, batch_block=8):
    B, C0, H0, W0 = x_nchw.shape
    BT = max(1, min(batch_block, B))
    B_pad = ((B + BT - 1) // BT) * BT
    nblk = B_pad // BT

    # glue: NCHW -> (B*H, W*C) lane-flattened layout (tiny, once)
    x = jnp.transpose(x_nchw, (0, 2, 3, 1)).astype(jnp.float32)
    if B_pad != B:
        x = jnp.concatenate([x, jnp.zeros((B_pad - B, H0, W0, C0), x.dtype)], axis=0)
    x2 = x.reshape(B_pad * H0, W0 * C0)

    # ------------------------- host-side plan -------------------------------
    conv_weights, selectors, shift_vecs = [], [], []
    conv_plan = []
    H, W, C = H0, W0, C0
    for stage in params["conv_stages"]:
        convs = stage["convs"]
        for i, cp in enumerate(convs):
            Cout = cp["w"].shape[-1]
            pool = (i == len(convs) - 1)            # pool_last=True, pooling=2
            if pool:
                assert H % 2 == 0 and W % 2 == 0
            scale, shift = _fold_bn(cp)
            w_idx = len(conv_weights)
            conv_weights.append(_banded_conv_mat(cp["w"], scale, W))
            s_idx = len(shift_vecs)
            shift_vecs.append(jnp.tile(shift, W))   # (W*Cout,) lane-broadcast shift
            sel_idx = None
            if pool:
                sel_idx = len(selectors)
                selectors.append(_pool_even_selector(W, Cout))
            conv_plan.append(dict(H=H, W=W, Cin=C, Cout=Cout, pool=pool,
                                  w_idx=w_idx, s_idx=s_idx, sel_idx=sel_idx))
            C = Cout
            if pool:
                H //= 2
                W //= 2
    Hf, Wf, Cf = H, W, C

    dense_weights, dense_plan = [], []
    first = True
    for lp in params["dense_layers"]:
        scale, shift = _fold_bn(lp)
        w = lp["w"] * scale[None, :]
        if first:                                    # fold NCHW flatten order
            w = _permute_first_dense(w, Cf, Hf, Wf)
        dense_weights.append(w.astype(jnp.bfloat16))
        s_idx = len(shift_vecs)
        shift_vecs.append(shift)
        dense_plan.append(dict(w_idx=len(dense_weights) - 1, s_idx=s_idx, act=True))
        first = False

    # fused (mu | logsigma) heads: one GEMM, weights concatenated along Fout
    wh = jnp.concatenate([params["mu_head"]["w"], params["logsigma_head"]["w"]], axis=1)
    bh = jnp.concatenate([params["mu_head"]["b"], params["logsigma_head"]["b"]])
    if first:
        wh = _permute_first_dense(wh, Cf, Hf, Wf)
    dense_weights.append(wh.astype(jnp.bfloat16))
    s_idx = len(shift_vecs)
    shift_vecs.append(bh)
    dense_plan.append(dict(w_idx=len(dense_weights) - 1, s_idx=s_idx, act=False))
    out_dim = int(wh.shape[-1])

    # all per-layer bias/BN shifts packed into ONE (n_layers, maxw) f32 input
    maxw = max(int(v.shape[0]) for v in shift_vecs)
    shifts = jnp.stack([jnp.pad(v.astype(jnp.float32), (0, maxw - int(v.shape[0])))
                        for v in shift_vecs])

    # ------------------------- inputs & specs -------------------------------
    inputs = [x2, shifts]
    in_specs = [pl.BlockSpec((BT * H0, W0 * C0), lambda i: (i, 0)),
                _full_spec(shifts.shape)]
    conv_w_base = len(inputs)
    for m in conv_weights:
        inputs.append(m)
        in_specs.append(_full_spec(m.shape))
    sel_base = len(inputs)
    for s in selectors:
        inputs.append(s)
        in_specs.append(_full_spec(s.shape))
    dense_base = len(inputs)
    for w in dense_weights:
        inputs.append(w)
        in_specs.append(_full_spec(w.shape))
    n_in = len(inputs)

    scratch = []
    for cl in conv_plan:
        cl["t_scr"] = len(scratch)          # K-fused im2row staging tile
        scratch.append(pltpu.VMEM((BT * cl["H"] + 2, 3 * cl["W"] * cl["Cin"]),
                                  jnp.float32))
        if cl["pool"]:
            cl["p_scr"] = len(scratch)      # pre-pool activation (for stride-2 reads)
            scratch.append(pltpu.VMEM((BT * cl["H"], cl["W"] * cl["Cout"]),
                                      jnp.float32))
    slab_scr = len(scratch)                 # final conv slab -> dense input relayout
    scratch.append(pltpu.VMEM((BT * Hf, Wf * Cf), jnp.float32))

    # ------------------------------ kernel ----------------------------------
    def kernel(*refs):
        in_refs = refs[:n_in]
        out_ref = refs[n_in]
        scr = refs[n_in + 1:]
        shifts_ref = in_refs[1]

        # BT images stacked along M; row index = b*H + h, lane index = w*C + c
        act = in_refs[0][...]                               # (BT*H0, W0*C0) f32

        # ---- conv stages: each 3x3 conv + BN + LeakyReLU is ONE K-fused GEMM ----
        for cl in conv_plan:
            Hc, Wc, Cin, Cout, pool = cl["H"], cl["W"], cl["Cin"], cl["Cout"], cl["pool"]
            M, WCi, WCo = BT * Hc, Wc * Cin, Wc * Cout
            t_ref = scr[cl["t_scr"]]

            # stage [act[r-1] | act[r] | act[r+1]] along K; per-image vertical
            # 'same' padding = masked tap sources + two edge rows.
            rid = lax.broadcasted_iota(jnp.int32, (M, 1), 0)
            src_up = jnp.where(rid % Hc == Hc - 1, 0.0, act)    # feeds tap r-1
            src_dn = jnp.where(rid % Hc == 0, 0.0, act)         # feeds tap r+1
            t_ref[2:M + 2, 0:WCi] = src_up
            t_ref[1:M + 1, WCi:2 * WCi] = act
            t_ref[0:M, 2 * WCi:3 * WCi] = src_dn
            zrow = jnp.zeros((1, WCi), jnp.float32)
            t_ref[1:2, 0:WCi] = zrow                            # image 0, row 0, up tap
            t_ref[M:M + 1, 2 * WCi:3 * WCi] = zrow              # last image, last row, dn tap

            g = t_ref[1:M + 1, :].astype(jnp.bfloat16)          # (M, 3*WCi)
            y = jnp.dot(g, in_refs[conv_w_base + cl["w_idx"]][...],
                        preferred_element_type=jnp.float32)     # (M, WCo)
            y = _leaky(y + shifts_ref[cl["s_idx"]:cl["s_idx"] + 1, 0:WCo])

            if pool:                                            # MaxPool2d(2)
                sy = scr[cl["p_scr"]]
                sy[...] = y
                Mh = M // 2
                # vertical max: one vectorized pass over stride-2 row slices
                v = jnp.maximum(sy[pl.ds(0, Mh, stride=2), :],
                                sy[pl.ds(1, Mh, stride=2), :])
                # horizontal max of lane-neighbours, then ONE 0/1 selector GEMM
                nb = jnp.concatenate([v[:, Cout:], v[:, :Cout]], axis=1)
                v = jnp.maximum(v, nb).astype(jnp.bfloat16)
                y = jnp.dot(v, in_refs[sel_base + cl["sel_idx"]][...],
                            preferred_element_type=jnp.float32)  # (Mh, (Wc//2)*Cout)
            act = y

        # ---- relayout conv slab to one lane-dense row per image (torch NCHW ----
        # ---- flatten order is folded into the first dense weight host-side) ----
        src = scr[slab_scr]
        src[...] = act                                          # (BT*Hf, Wf*Cf)
        xd = jnp.concatenate(
            [src[pl.ds(h, BT, stride=Hf), :] for h in range(Hf)], axis=1)
        xd = xd.astype(jnp.bfloat16)                            # (BT, Hf*Wf*Cf)

        # ---- DenseBlock (Linear + folded BN + LeakyReLU) + fused heads ----
        y = None
        for dl in dense_plan:
            w_ref = in_refs[dense_base + dl["w_idx"]]
            width = int(w_ref.shape[-1])
            y = jnp.dot(xd, w_ref[...], preferred_element_type=jnp.float32)
            y = y + shifts_ref[dl["s_idx"]:dl["s_idx"] + 1, 0:width]
            if dl["act"]:
                y = _leaky(y)
                xd = y.astype(jnp.bfloat16)

        out_ref[...] = y                                        # (BT, 2*latent)

    out = pl.pallas_call(
        kernel,
        out_shape=jax.ShapeDtypeStruct((B_pad, out_dim), jnp.float32),
        grid=(nblk,),
        in_specs=in_specs,
        out_specs=pl.BlockSpec((BT, out_dim), lambda i: (i, 0)),
        scratch_shapes=scratch,
        compiler_params=pltpu.CompilerParams(
            dimension_semantics=("parallel",),
            vmem_limit_bytes=32 * 1024 * 1024),
    )(*inputs)

    out = out[:B]
    half = out_dim // 2
    return out[:, :half], out[:, half:]


# ----------------------------------------------------------------------------
# Pure-JAX reference (eval-mode BN), used only for a loose numerical check
# ----------------------------------------------------------------------------
def _reference_forward(x_nchw, params):
    x = jnp.transpose(x_nchw, (0, 2, 3, 1))                    # NHWC
    for stage in params["conv_stages"]:
        convs = stage["convs"]
        for i, cp in enumerate(convs):
            z = jax.lax.conv_general_dilated(
                x, cp["w"], window_strides=(1, 1), padding="SAME",
                dimension_numbers=("NHWC", "HWIO", "NHWC")) + cp["b"]
            scale = cp["gamma"] / jnp.sqrt(cp["var"] + BN_EPS)
            z = (z - cp["mean"]) * scale + cp["beta"]
            z = jnp.where(z >= 0, z, LEAKY_SLOPE * z)
            if i == len(convs) - 1:
                z = jax.lax.reduce_window(z, -jnp.inf, jax.lax.max,
                                          (1, 2, 2, 1), (1, 2, 2, 1), "VALID")
            x = z
    B = x.shape[0]
    x = jnp.transpose(x, (0, 3, 1, 2)).reshape(B, -1)          # torch.flatten (NCHW)
    for lp in params["dense_layers"]:
        scale = lp["gamma"] / jnp.sqrt(lp["var"] + BN_EPS)
        z = x @ lp["w"] + lp["b"]
        z = (z - lp["mean"]) * scale + lp["beta"]
        x = jnp.where(z >= 0, z, LEAKY_SLOPE * z)
    mu = x @ params["mu_head"]["w"] + params["mu_head"]["b"]
    ls = x @ params["logsigma_head"]["w"] + params["logsigma_head"]["b"]
    return mu, ls


# ----------------------------------------------------------------------------
# Deterministic synthetic parameters (mirrors ConvEncoder.__init__ shapes)
# ----------------------------------------------------------------------------
def init_params(key, num_channels, num_features):
    keys = iter(jax.random.split(key, 64))

    def conv_params(cin, cout):
        return {
            "w": 0.1 * jax.random.normal(next(keys), (3, 3, cin, cout), jnp.float32),
            "b": 0.05 * jax.random.normal(next(keys), (cout,), jnp.float32),
            "gamma": 1.0 + 0.1 * jax.random.normal(next(keys), (cout,), jnp.float32),
            "beta": 0.05 * jax.random.normal(next(keys), (cout,), jnp.float32),
            "mean": 0.05 * jax.random.normal(next(keys), (cout,), jnp.float32),
            "var": 1.0 + 0.1 * jax.random.uniform(next(keys), (cout,), jnp.float32),
        }

    def dense_params(fin, fout, with_bn):
        p = {
            "w": 0.1 * jax.random.normal(next(keys), (fin, fout), jnp.float32),
            "b": 0.05 * jax.random.normal(next(keys), (fout,), jnp.float32),
        }
        if with_bn:
            p.update({
                "gamma": 1.0 + 0.1 * jax.random.normal(next(keys), (fout,), jnp.float32),
                "beta": 0.05 * jax.random.normal(next(keys), (fout,), jnp.float32),
                "mean": 0.05 * jax.random.normal(next(keys), (fout,), jnp.float32),
                "var": 1.0 + 0.1 * jax.random.uniform(next(keys), (fout,), jnp.float32),
            })
        return p

    params = {"conv_stages": [], "dense_layers": []}
    for cin, cout in zip(num_channels[:-1], num_channels[1:]):
        # double_conv=True, inout_first=True: (cin->cout), (cout->cout)
        params["conv_stages"].append(
            {"convs": [conv_params(cin, cout), conv_params(cout, cout)]}
        )
    for fin, fout in zip(num_features[:-2], num_features[1:-1]):
        params["dense_layers"].append(dense_params(fin, fout, with_bn=True))
    params["mu_head"] = dense_params(num_features[-2], num_features[-1], with_bn=False)
    params["logsigma_head"] = dense_params(num_features[-2], num_features[-1], with_bn=False)
    return params


if __name__ == "__main__":
    key = jax.random.PRNGKey(0)
    k_x, k_p = jax.random.split(key)

    num_channels = [4, 8, 16]            # two conv stages: 4->8->16, spatial 16->8->4
    num_features = [16 * 4 * 4, 64, 32]  # flatten=256, one dense layer, latent=32

    x = jax.random.normal(k_x, (2, 4, 16, 16), jnp.float32)   # NCHW, like PyTorch
    params = init_params(k_p, num_channels, num_features)

    mu, logsigma = jax.jit(conv_encoder_forward)(x, params)
    jax.block_until_ready((mu, logsigma))

    assert mu.shape == (2, num_features[-1]) and logsigma.shape == (2, num_features[-1])
    assert mu.dtype == jnp.float32 and logsigma.dtype == jnp.float32

    # loose check vs. f32 reference (bf16 GEMM operands => small rounding differences)
    mu_ref, ls_ref = _reference_forward(x, params)
    err = max(float(jnp.max(jnp.abs(mu - mu_ref))),
              float(jnp.max(jnp.abs(logsigma - ls_ref))))
    assert err < 8e-2, f"max abs error vs reference: {err}"

    print("KERNEL_OK")
</pallas_src>

<mosaic_0001>
module attributes {stable_mosaic.version = 11 : i64} {
  func.func @kernel(%arg0: i32, %arg1: memref<32x64xf32, #tpu.memory_space<vmem>>, %arg2: memref<6x128xf32, #tpu.memory_space<vmem>>, %arg3: memref<192x128xbf16, #tpu.memory_space<vmem>>, %arg4: memref<384x128xbf16, #tpu.memory_space<vmem>>, %arg5: memref<192x128xbf16, #tpu.memory_space<vmem>>, %arg6: memref<384x128xbf16, #tpu.memory_space<vmem>>, %arg7: memref<128x64xbf16, #tpu.memory_space<vmem>>, %arg8: memref<128x64xbf16, #tpu.memory_space<vmem>>, %arg9: memref<256x64xbf16, #tpu.memory_space<vmem>>, %arg10: memref<64x64xbf16, #tpu.memory_space<vmem>>, %arg11: memref<2x64xf32, #tpu.memory_space<vmem>>, %arg12: memref<34x192xf32, #tpu.memory_space<vmem>>, %arg13: memref<34x384xf32, #tpu.memory_space<vmem>>, %arg14: memref<32x128xf32, #tpu.memory_space<vmem>>, %arg15: memref<18x192xf32, #tpu.memory_space<vmem>>, %arg16: memref<18x384xf32, #tpu.memory_space<vmem>>, %arg17: memref<16x128xf32, #tpu.memory_space<vmem>>, %arg18: memref<8x64xf32, #tpu.memory_space<vmem>>) attributes {dimension_semantics = [#tpu.dimension_semantics<parallel>], iteration_bounds = array<i64: 1>, scalar_prefetch = 0 : i64, scratch_operands = 7 : i64, tpu.core_type = #tpu.core_type<tc>, window_params = [{transform_indices = @transform_0, window_bounds = array<i64: 32, 64>}, {pipeline_mode = #tpu.pipeline_mode<synchronous>, transform_indices = @transform_1, window_bounds = array<i64: 6, 128>}, {pipeline_mode = #tpu.pipeline_mode<synchronous>, transform_indices = @transform_2, window_bounds = array<i64: 192, 128>}, {pipeline_mode = #tpu.pipeline_mode<synchronous>, transform_indices = @transform_3, window_bounds = array<i64: 384, 128>}, {pipeline_mode = #tpu.pipeline_mode<synchronous>, transform_indices = @transform_4, window_bounds = array<i64: 192, 128>}, {pipeline_mode = #tpu.pipeline_mode<synchronous>, transform_indices = @transform_5, window_bounds = array<i64: 384, 128>}, {pipeline_mode = #tpu.pipeline_mode<synchronous>, transform_indices = @transform_6, window_bounds = array<i64: 128, 64>}, {pipeline_mode = #tpu.pipeline_mode<synchronous>, transform_indices = @transform_7, window_bounds = array<i64: 128, 64>}, {pipeline_mode = #tpu.pipeline_mode<synchronous>, transform_indices = @transform_8, window_bounds = array<i64: 256, 64>}, {pipeline_mode = #tpu.pipeline_mode<synchronous>, transform_indices = @transform_9, window_bounds = array<i64: 64, 64>}, {transform_indices = @transform_10, window_bounds = array<i64: 2, 64>}]} {
    %c0 = arith.constant 0 : index
    %c0_0 = arith.constant 0 : index
    %0 = vector.load %arg1[%c0, %c0_0] : memref<32x64xf32, #tpu.memory_space<vmem>>, vector<32x64xf32>
    %1 = tpu.iota {dimensions = array<i32: 0>} : vector<32x1xi32>
    %c16_i32 = arith.constant 16 : i32
    %c0_i32 = arith.constant 0 : i32
    %2 = arith.cmpi eq, %c16_i32, %c0_i32 : i32
    %c1_i32 = arith.constant 1 : i32
    %3 = arith.select %2, %c1_i32, %c16_i32 : i32
    %4 = vector.broadcast %3 : i32 to vector<32x1xi32>
    %5 = arith.remsi %1, %4 : vector<32x1xi32>
    %c0_i32_1 = arith.constant 0 : i32
    %6 = vector.broadcast %c0_i32_1 : i32 to vector<32x1xi32>
    %7 = arith.cmpi ne, %5, %6 : vector<32x1xi32>
    %c0_i32_2 = arith.constant 0 : i32
    %8 = vector.broadcast %c0_i32_2 : i32 to vector<32x1xi32>
    %9 = arith.cmpi slt, %5, %8 : vector<32x1xi32>
    %c0_i32_3 = arith.constant 0 : i32
    %10 = arith.cmpi slt, %3, %c0_i32_3 : i32
    %11 = vector.broadcast %10 : i1 to vector<32x1xi1>
    %12 = vector.broadcast %11 : vector<32x1xi1> to vector<32x1xi1>
    %13 = arith.xori %9, %12 : vector<32x1xi1>
    %14 = arith.andi %13, %7 : vector<32x1xi1>
    %15 = vector.broadcast %3 : i32 to vector<32x1xi32>
    %16 = arith.addi %5, %15 : vector<32x1xi32>
    %17 = arith.select %14, %16, %5 : vector<32x1xi1>, vector<32x1xi32>
    %c15_i32 = arith.constant 15 : i32
    %18 = vector.broadcast %c15_i32 : i32 to vector<32x1xi32>
    %19 = arith.cmpi eq, %17, %18 : vector<32x1xi32>
    %cst = arith.constant 0.000000e+00 : f32
    %20 = vector.shape_cast %19 : vector<32x1xi1> to vector<32x1xi1>
    %21 = vector.broadcast %20 : vector<32x1xi1> to vector<32x64xi1>
    %22 = vector.broadcast %cst : f32 to vector<32x64xf32>
    %23 = arith.select %21, %22, %0 : vector<32x64xi1>, vector<32x64xf32>
    %c16_i32_4 = arith.constant 16 : i32
    %c0_i32_5 = arith.constant 0 : i32
    %24 = arith.cmpi eq, %c16_i32_4, %c0_i32_5 : i32
    %c1_i32_6 = arith.constant 1 : i32
    %25 = arith.select %24, %c1_i32_6, %c16_i32_4 : i32
    %26 = vector.broadcast %25 : i32 to vector<32x1xi32>
    %27 = arith.remsi %1, %26 : vector<32x1xi32>
    %c0_i32_7 = arith.constant 0 : i32
    %28 = vector.broadcast %c0_i32_7 : i32 to vector<32x1xi32>
    %29 = arith.cmpi ne, %27, %28 : vector<32x1xi32>
    %c0_i32_8 = arith.constant 0 : i32
    %30 = vector.broadcast %c0_i32_8 : i32 to vector<32x1xi32>
    %31 = arith.cmpi slt, %27, %30 : vector<32x1xi32>
    %c0_i32_9 = arith.constant 0 : i32
    %32 = arith.cmpi slt, %25, %c0_i32_9 : i32
    %33 = vector.broadcast %32 : i1 to vector<32x1xi1>
    %34 = vector.broadcast %33 : vector<32x1xi1> to vector<32x1xi1>
    %35 = arith.xori %31, %34 : vector<32x1xi1>
    %36 = arith.andi %35, %29 : vector<32x1xi1>
    %37 = vector.broadcast %25 : i32 to vector<32x1xi32>
    %38 = arith.addi %27, %37 : vector<32x1xi32>
    %39 = arith.select %36, %38, %27 : vector<32x1xi1>, vector<32x1xi32>
    %c0_i32_10 = arith.constant 0 : i32
    %40 = vector.broadcast %c0_i32_10 : i32 to vector<32x1xi32>
    %41 = arith.cmpi eq, %39, %40 : vector<32x1xi32>
    %cst_11 = arith.constant 0.000000e+00 : f32
    %42 = vector.shape_cast %41 : vector<32x1xi1> to vector<32x1xi1>
    %43 = vector.broadcast %42 : vector<32x1xi1> to vector<32x64xi1>
    %44 = vector.broadcast %cst_11 : f32 to vector<32x64xf32>
    %45 = arith.select %43, %44, %0 : vector<32x64xi1>, vector<32x64xf32>
    %c2 = arith.constant 2 : index
    %c0_12 = arith.constant 0 : index
    %46 = vector.load %arg12[%c2, %c0_12] : memref<34x192xf32, #tpu.memory_space<vmem>>, vector<32x64xf32>
    tpu.vector_store %arg12[%c2, %c0_12], %23 {strides = array<i32>} : memref<34x192xf32, #tpu.memory_space<vmem>>, vector<32x64xf32>,
    %c1 = arith.constant 1 : index
    %c64 = arith.constant 64 : index
    %47 = vector.load %arg12[%c1, %c64] : memref<34x192xf32, #tpu.memory_space<vmem>>, vector<32x64xf32>
    tpu.vector_store %arg12[%c1, %c64], %0 {strides = array<i32>} : memref<34x192xf32, #tpu.memory_space<vmem>>, vector<32x64xf32>,
    %c0_13 = arith.constant 0 : index
    %c128 = arith.constant 128 : index
    %48 = vector.load %arg12[%c0_13, %c128] : memref<34x192xf32, #tpu.memory_space<vmem>>, vector<32x64xf32>
    tpu.vector_store %arg12[%c0_13, %c128], %45 {strides = array<i32>} : memref<34x192xf32, #tpu.memory_space<vmem>>, vector<32x64xf32>,
    %cst_14 = arith.constant 0.000000e+00 : f32
    %49 = vector.broadcast %cst_14 : f32 to vector<1x64xf32>
    %c1_15 = arith.constant 1 : index
    %c0_16 = arith.constant 0 : index
    %50 = vector.load %arg12[%c1_15, %c0_16] : memref<34x192xf32, #tpu.memory_space<vmem>>, vector<1x64xf32>
    tpu.vector_store %arg12[%c1_15, %c0_16], %49 {strides = array<i32>} : memref<34x192xf32, #tpu.memory_space<vmem>>, vector<1x64xf32>,
    %c32 = arith.constant 32 : index
    %c128_17 = arith.constant 128 : index
    %51 = vector.load %arg12[%c32, %c128_17] : memref<34x192xf32, #tpu.memory_space<vmem>>, vector<1x64xf32>
    tpu.vector_store %arg12[%c32, %c128_17], %49 {strides = array<i32>} : memref<34x192xf32, #tpu.memory_space<vmem>>, vector<1x64xf32>,
    %c1_18 = arith.constant 1 : index
    %c0_19 = arith.constant 0 : index
    %52 = vector.load %arg12[%c1_18, %c0_19] : memref<34x192xf32, #tpu.memory_space<vmem>>, vector<32x192xf32>
    %53 = arith.truncf %52 : vector<32x192xf32> to vector<32x192xbf16>
    %c0_20 = arith.constant 0 : index
    %c0_21 = arith.constant 0 : index
    %54 = vector.load %arg3[%c0_20, %c0_21] : memref<192x128xbf16, #tpu.memory_space<vmem>>, vector<192x128xbf16>
    %cst_22 = arith.constant dense<0.000000e+00> : vector<32x128xf32>
    %55 = tpu.matmul %53, %54, %cst_22 {dimension_numbers = #tpu.dot_dimension_numbers<[1], [0], [0], [1], [0, 0, 1, 1], [], []>} : vector<32x192xbf16>, vector<192x128xbf16>, vector<32x128xf32> -> vector<32x128xf32>
    %c0_23 = arith.constant 0 : index
    %c0_24 = arith.constant 0 : index
    %56 = vector.load %arg2[%c0_23, %c0_24] : memref<6x128xf32, #tpu.memory_space<vmem>>, vector<1x128xf32>
    %57 = vector.broadcast %56 : vector<1x128xf32> to vector<32x128xf32>
    %58 = arith.addf %55, %57 : vector<32x128xf32>
    %cst_25 = arith.constant 0.000000e+00 : f32
    %59 = vector.broadcast %cst_25 : f32 to vector<32x128xf32>
    %60 = arith.cmpf oge, %58, %59 : vector<32x128xf32>
    %cst_26 = arith.constant 0.00999999977 : f32
    %61 = vector.broadcast %cst_26 : f32 to vector<32x128xf32>
    %62 = arith.mulf %61, %58 : vector<32x128xf32>
    %63 = arith.select %60, %58, %62 : vector<32x128xi1>, vector<32x128xf32>
    %64 = tpu.iota {dimensions = array<i32: 0>} : vector<32x1xi32>
    %c16_i32_27 = arith.constant 16 : i32
    %c0_i32_28 = arith.constant 0 : i32
    %65 = arith.cmpi eq, %c16_i32_27, %c0_i32_28 : i32
    %c1_i32_29 = arith.constant 1 : i32
    %66 = arith.select %65, %c1_i32_29, %c16_i32_27 : i32
    %67 = vector.broadcast %66 : i32 to vector<32x1xi32>
    %68 = arith.remsi %64, %67 : vector<32x1xi32>
    %c0_i32_30 = arith.constant 0 : i32
    %69 = vector.broadcast %c0_i32_30 : i32 to vector<32x1xi32>
    %70 = arith.cmpi ne, %68, %69 : vector<32x1xi32>
    %c0_i32_31 = arith.constant 0 : i32
    %71 = vector.broadcast %c0_i32_31 : i32 to vector<32x1xi32>
    %72 = arith.cmpi slt, %68, %71 : vector<32x1xi32>
    %c0_i32_32 = arith.constant 0 : i32
    %73 = arith.cmpi slt, %66, %c0_i32_32 : i32
    %74 = vector.broadcast %73 : i1 to vector<32x1xi1>
    %75 = vector.broadcast %74 : vector<32x1xi1> to vector<32x1xi1>
    %76 = arith.xori %72, %75 : vector<32x1xi1>
    %77 = arith.andi %76, %70 : vector<32x1xi1>
    %78 = vector.broadcast %66 : i32 to vector<32x1xi32>
    %79 = arith.addi %68, %78 : vector<32x1xi32>
    %80 = arith.select %77, %79, %68 : vector<32x1xi1>, vector<32x1xi32>
    %c15_i32_33 = arith.constant 15 : i32
    %81 = vector.broadcast %c15_i32_33 : i32 to vector<32x1xi32>
    %82 = arith.cmpi eq, %80, %81 : vector<32x1xi32>
    %cst_34 = arith.constant 0.000000e+00 : f32
    %83 = vector.shape_cast %82 : vector<32x1xi1> to vector<32x1xi1>
    %84 = vector.broadcast %83 : vector<32x1xi1> to vector<32x128xi1>
    %85 = vector.broadcast %cst_34 : f32 to vector<32x128xf32>
    %86 = arith.select %84, %85, %63 : vector<32x128xi1>, vector<32x128xf32>
    %c16_i32_35 = arith.constant 16 : i32
    %c0_i32_36 = arith.constant 0 : i32
    %87 = arith.cmpi eq, %c16_i32_35, %c0_i32_36 : i32
    %c1_i32_37 = arith.constant 1 : i32
    %88 = arith.select %87, %c1_i32_37, %c16_i32_35 : i32
    %89 = vector.broadcast %88 : i32 to vector<32x1xi32>
    %90 = arith.remsi %64, %89 : vector<32x1xi32>
    %c0_i32_38 = arith.constant 0 : i32
    %91 = vector.broadcast %c0_i32_38 : i32 to vector<32x1xi32>
    %92 = arith.cmpi ne, %90, %91 : vector<32x1xi32>
    %c0_i32_39 = arith.constant 0 : i32
    %93 = vector.broadcast %c0_i32_39 : i32 to vector<32x1xi32>
    %94 = arith.cmpi slt, %90, %93 : vector<32x1xi32>
    %c0_i32_40 = arith.constant 0 : i32
    %95 = arith.cmpi slt, %88, %c0_i32_40 : i32
    %96 = vector.broadcast %95 : i1 to vector<32x1xi1>
    %97 = vector.broadcast %96 : vector<32x1xi1> to vector<32x1xi1>
    %98 = arith.xori %94, %97 : vector<32x1xi1>
    %99 = arith.andi %98, %92 : vector<32x1xi1>
    %100 = vector.broadcast %88 : i32 to vector<32x1xi32>
    %101 = arith.addi %90, %100 : vector<32x1xi32>
    %102 = arith.select %99, %101, %90 : vector<32x1xi1>, vector<32x1xi32>
    %c0_i32_41 = arith.constant 0 : i32
    %103 = vector.broadcast %c0_i32_41 : i32 to vector<32x1xi32>
    %104 = arith.cmpi eq, %102, %103 : vector<32x1xi32>
    %cst_42 = arith.constant 0.000000e+00 : f32
    %105 = vector.shape_cast %104 : vector<32x1xi1> to vector<32x1xi1>
    %106 = vector.broadcast %105 : vector<32x1xi1> to vector<32x128xi1>
    %107 = vector.broadcast %cst_42 : f32 to vector<32x128xf32>
    %108 = arith.select %106, %107, %63 : vector<32x128xi1>, vector<32x128xf32>
    %c2_43 = arith.constant 2 : index
    %c0_44 = arith.constant 0 : index
    %109 = vector.load %arg13[%c2_43, %c0_44] : memref<34x384xf32, #tpu.memory_space<vmem>>, vector<32x128xf32>
    tpu.vector_store %arg13[%c2_43, %c0_44], %86 {strides = array<i32>} : memref<34x384xf32, #tpu.memory_space<vmem>>, vector<32x128xf32>,
    %c1_45 = arith.constant 1 : index
    %c128_46 = arith.constant 128 : index
    %110 = vector.load %arg13[%c1_45, %c128_46] : memref<34x384xf32, #tpu.memory_space<vmem>>, vector<32x128xf32>
    tpu.vector_store %arg13[%c1_45, %c128_46], %63 {strides = array<i32>} : memref<34x384xf32, #tpu.memory_space<vmem>>, vector<32x128xf32>,
    %c0_47 = arith.constant 0 : index
    %c256 = arith.constant 256 : index
    %111 = vector.load %arg13[%c0_47, %c256] : memref<34x384xf32, #tpu.memory_space<vmem>>, vector<32x128xf32>
    tpu.vector_store %arg13[%c0_47, %c256], %108 {strides = array<i32>} : memref<34x384xf32, #tpu.memory_space<vmem>>, vector<32x128xf32>,
    %cst_48 = arith.constant 0.000000e+00 : f32
    %112 = vector.broadcast %cst_48 : f32 to vector<1x128xf32>
    %c1_49 = arith.constant 1 : index
    %c0_50 = arith.constant 0 : index
    %113 = vector.load %arg13[%c1_49, %c0_50] : memref<34x384xf32, #tpu.memory_space<vmem>>, vector<1x128xf32>
    tpu.vector_store %arg13[%c1_49, %c0_50], %112 {strides = array<i32>} : memref<34x384xf32, #tpu.memory_space<vmem>>, vector<1x128xf32>,
    %c32_51 = arith.constant 32 : index
    %c256_52 = arith.constant 256 : index
    %114 = vector.load %arg13[%c32_51, %c256_52] : memref<34x384xf32, #tpu.memory_space<vmem>>, vector<1x128xf32>
    tpu.vector_store %arg13[%c32_51, %c256_52], %112 {strides = array<i32>} : memref<34x384xf32, #tpu.memory_space<vmem>>, vector<1x128xf32>,
    %c1_53 = arith.constant 1 : index
    %c0_54 = arith.constant 0 : index
    %115 = vector.load %arg13[%c1_53, %c0_54] : memref<34x384xf32, #tpu.memory_space<vmem>>, vector<32x384xf32>
    %116 = arith.truncf %115 : vector<32x384xf32> to vector<32x384xbf16>
    %c0_55 = arith.constant 0 : index
    %c0_56 = arith.constant 0 : index
    %117 = vector.load %arg4[%c0_55, %c0_56] : memref<384x128xbf16, #tpu.memory_space<vmem>>, vector<384x128xbf16>
    %cst_57 = arith.constant dense<0.000000e+00> : vector<32x128xf32>
    %118 = tpu.matmul %116, %117, %cst_57 {dimension_numbers = #tpu.dot_dimension_numbers<[1], [0], [0], [1], [0, 0, 1, 1], [], []>} : vector<32x384xbf16>, vector<384x128xbf16>, vector<32x128xf32> -> vector<32x128xf32>
    %c1_58 = arith.constant 1 : index
    %c0_59 = arith.constant 0 : index
    %119 = vector.load %arg2[%c1_58, %c0_59] : memref<6x128xf32, #tpu.memory_space<vmem>>, vector<1x128xf32>
    %120 = vector.broadcast %119 : vector<1x128xf32> to vector<32x128xf32>
    %121 = arith.addf %118, %120 : vector<32x128xf32>
    %cst_60 = arith.constant 0.000000e+00 : f32
    %122 = vector.broadcast %cst_60 : f32 to vector<32x128xf32>
    %123 = arith.cmpf oge, %121, %122 : vector<32x128xf32>
    %cst_61 = arith.constant 0.00999999977 : f32
    %124 = vector.broadcast %cst_61 : f32 to vector<32x128xf32>
    %125 = arith.mulf %124, %121 : vector<32x128xf32>
    %126 = arith.select %123, %121, %125 : vector<32x128xi1>, vector<32x128xf32>
    %c0_62 = arith.constant 0 : index
    %c0_63 = arith.constant 0 : index
    %127 = vector.load %arg14[%c0_62, %c0_63] : memref<32x128xf32, #tpu.memory_space<vmem>>, vector<32x128xf32>
    tpu.vector_store %arg14[%c0_62, %c0_63], %126 {strides = array<i32>} : memref<32x128xf32, #tpu.memory_space<vmem>>, vector<32x128xf32>,
    %c0_64 = arith.constant 0 : index
    %c0_65 = arith.constant 0 : index
    %128 = tpu.strided_load %arg14[%c0_64, %c0_65] {strides = array<i32: 2, 1>} : memref<32x128xf32, #tpu.memory_space<vmem>>, vector<16x128xf32>
    %c1_66 = arith.constant 1 : index
    %c0_67 = arith.constant 0 : index
    %129 = tpu.strided_load %arg14[%c1_66, %c0_67] {strides = array<i32: 2, 1>} : memref<32x128xf32, #tpu.memory_space<vmem>>, vector<16x128xf32>
    %130 = arith.maximumf %128, %129 : vector<16x128xf32>
    %131 = vector.extract_strided_slice %130 {offsets = [0, 8], sizes = [16, 120], strides = [1, 1]} : vector<16x128xf32> to vector<16x120xf32>
    %132 = vector.extract_strided_slice %130 {offsets = [0, 0], sizes = [16, 8], strides = [1, 1]} : vector<16x128xf32> to vector<16x8xf32>
    %133 = tpu.concatenate %131, %132 in 1 : vector<16x120xf32>, vector<16x8xf32> -> vector<16x128xf32>
    %134 = arith.maximumf %130, %133 : vector<16x128xf32>
    %135 = arith.truncf %134 : vector<16x128xf32> to vector<16x128xbf16>
    %c0_68 = arith.constant 0 : index
    %c0_69 = arith.constant 0 : index
    %136 = vector.load %arg7[%c0_68, %c0_69] : memref<128x64xbf16, #tpu.memory_space<vmem>>, vector<128x64xbf16>
    %cst_70 = arith.constant dense<0.000000e+00> : vector<16x64xf32>
    %137 = tpu.matmul %135, %136, %cst_70 {dimension_numbers = #tpu.dot_dimension_numbers<[1], [0], [0], [1], [0, 0, 1, 1], [], []>} : vector<16x128xbf16>, vector<128x64xbf16>, vector<16x64xf32> -> vector<16x64xf32>
    %138 = tpu.iota {dimensions = array<i32: 0>} : vector<16x1xi32>
    %c8_i32 = arith.constant 8 : i32
    %c0_i32_71 = arith.constant 0 : i32
    %139 = arith.cmpi eq, %c8_i32, %c0_i32_71 : i32
    %c1_i32_72 = arith.constant 1 : i32
    %140 = arith.select %139, %c1_i32_72, %c8_i32 : i32
    %141 = vector.broadcast %140 : i32 to vector<16x1xi32>
    %142 = arith.remsi %138, %141 : vector<16x1xi32>
    %c0_i32_73 = arith.constant 0 : i32
    %143 = vector.broadcast %c0_i32_73 : i32 to vector<16x1xi32>
    %144 = arith.cmpi ne, %142, %143 : vector<16x1xi32>
    %c0_i32_74 = arith.constant 0 : i32
    %145 = vector.broadcast %c0_i32_74 : i32 to vector<16x1xi32>
    %146 = arith.cmpi slt, %142, %145 : vector<16x1xi32>
    %c0_i32_75 = arith.constant 0 : i32
    %147 = arith.cmpi slt, %140, %c0_i32_75 : i32
    %148 = vector.broadcast %147 : i1 to vector<16x1xi1>
    %149 = vector.broadcast %148 : vector<16x1xi1> to vector<16x1xi1>
    %150 = arith.xori %146, %149 : vector<16x1xi1>
    %151 = arith.andi %150, %144 : vector<16x1xi1>
    %152 = vector.broadcast %140 : i32 to vector<16x1xi32>
    %153 = arith.addi %142, %152 : vector<16x1xi32>
    %154 = arith.select %151, %153, %142 : vector<16x1xi1>, vector<16x1xi32>
    %c7_i32 = arith.constant 7 : i32
    %155 = vector.broadcast %c7_i32 : i32 to vector<16x1xi32>
    %156 = arith.cmpi eq, %154, %155 : vector<16x1xi32>
    %cst_76 = arith.constant 0.000000e+00 : f32
    %157 = vector.shape_cast %156 : vector<16x1xi1> to vector<16x1xi1>
    %158 = vector.broadcast %157 : vector<16x1xi1> to vector<16x64xi1>
    %159 = vector.broadcast %cst_76 : f32 to vector<16x64xf32>
    %160 = arith.select %158, %159, %137 : vector<16x64xi1>, vector<16x64xf32>
    %c8_i32_77 = arith.constant 8 : i32
    %c0_i32_78 = arith.constant 0 : i32
    %161 = arith.cmpi eq, %c8_i32_77, %c0_i32_78 : i32
    %c1_i32_79 = arith.constant 1 : i32
    %162 = arith.select %161, %c1_i32_79, %c8_i32_77 : i32
    %163 = vector.broadcast %162 : i32 to vector<16x1xi32>
    %164 = arith.remsi %138, %163 : vector<16x1xi32>
    %c0_i32_80 = arith.constant 0 : i32
    %165 = vector.broadcast %c0_i32_80 : i32 to vector<16x1xi32>
    %166 = arith.cmpi ne, %164, %165 : vector<16x1xi32>
    %c0_i32_81 = arith.constant 0 : i32
    %167 = vector.broadcast %c0_i32_81 : i32 to vector<16x1xi32>
    %168 = arith.cmpi slt, %164, %167 : vector<16x1xi32>
    %c0_i32_82 = arith.constant 0 : i32
    %169 = arith.cmpi slt, %162, %c0_i32_82 : i32
    %170 = vector.broadcast %169 : i1 to vector<16x1xi1>
    %171 = vector.broadcast %170 : vector<16x1xi1> to vector<16x1xi1>
    %172 = arith.xori %168, %171 : vector<16x1xi1>
    %173 = arith.andi %172, %166 : vector<16x1xi1>
    %174 = vector.broadcast %162 : i32 to vector<16x1xi32>
    %175 = arith.addi %164, %174 : vector<16x1xi32>
    %176 = arith.select %173, %175, %164 : vector<16x1xi1>, vector<16x1xi32>
    %c0_i32_83 = arith.constant 0 : i32
    %177 = vector.broadcast %c0_i32_83 : i32 to vector<16x1xi32>
    %178 = arith.cmpi eq, %176, %177 : vector<16x1xi32>
    %cst_84 = arith.constant 0.000000e+00 : f32
    %179 = vector.shape_cast %178 : vector<16x1xi1> to vector<16x1xi1>
    %180 = vector.broadcast %179 : vector<16x1xi1> to vector<16x64xi1>
    %181 = vector.broadcast %cst_84 : f32 to vector<16x64xf32>
    %182 = arith.select %180, %181, %137 : vector<16x64xi1>, vector<16x64xf32>
    %c2_85 = arith.constant 2 : index
    %c0_86 = arith.constant 0 : index
    %183 = vector.load %arg15[%c2_85, %c0_86] : memref<18x192xf32, #tpu.memory_space<vmem>>, vector<16x64xf32>
    tpu.vector_store %arg15[%c2_85, %c0_86], %160 {strides = array<i32>} : memref<18x192xf32, #tpu.memory_space<vmem>>, vector<16x64xf32>,
    %c1_87 = arith.constant 1 : index
    %c64_88 = arith.constant 64 : index
    %184 = vector.load %arg15[%c1_87, %c64_88] : memref<18x192xf32, #tpu.memory_space<vmem>>, vector<16x64xf32>
    tpu.vector_store %arg15[%c1_87, %c64_88], %137 {strides = array<i32>} : memref<18x192xf32, #tpu.memory_space<vmem>>, vector<16x64xf32>,
    %c0_89 = arith.constant 0 : index
    %c128_90 = arith.constant 128 : index
    %185 = vector.load %arg15[%c0_89, %c128_90] : memref<18x192xf32, #tpu.memory_space<vmem>>, vector<16x64xf32>
    tpu.vector_store %arg15[%c0_89, %c128_90], %182 {strides = array<i32>} : memref<18x192xf32, #tpu.memory_space<vmem>>, vector<16x64xf32>,
    %cst_91 = arith.constant 0.000000e+00 : f32
    %186 = vector.broadcast %cst_91 : f32 to vector<1x64xf32>
    %c1_92 = arith.constant 1 : index
    %c0_93 = arith.constant 0 : index
    %187 = vector.load %arg15[%c1_92, %c0_93] : memref<18x192xf32, #tpu.memory_space<vmem>>, vector<1x64xf32>
    tpu.vector_store %arg15[%c1_92, %c0_93], %186 {strides = array<i32>} : memref<18x192xf32, #tpu.memory_space<vmem>>, vector<1x64xf32>,
    %c16 = arith.constant 16 : index
    %c128_94 = arith.constant 128 : index
    %188 = vector.load %arg15[%c16, %c128_94] : memref<18x192xf32, #tpu.memory_space<vmem>>, vector<1x64xf32>
    tpu.vector_store %arg15[%c16, %c128_94], %186 {strides = array<i32>} : memref<18x192xf32, #tpu.memory_space<vmem>>, vector<1x64xf32>,
    %c1_95 = arith.constant 1 : index
    %c0_96 = arith.constant 0 : index
    %189 = vector.load %arg15[%c1_95, %c0_96] : memref<18x192xf32, #tpu.memory_space<vmem>>, vector<16x192xf32>
    %190 = arith.truncf %189 : vector<16x192xf32> to vector<16x192xbf16>
    %c0_97 = arith.constant 0 : index
    %c0_98 = arith.constant 0 : index
    %191 = vector.load %arg5[%c0_97, %c0_98] : memref<192x128xbf16, #tpu.memory_space<vmem>>, vector<192x128xbf16>
    %cst_99 = arith.constant dense<0.000000e+00> : vector<16x128xf32>
    %192 = tpu.matmul %190, %191, %cst_99 {dimension_numbers = #tpu.dot_dimension_numbers<[1], [0], [0], [1], [0, 0, 1, 1], [], []>} : vector<16x192xbf16>, vector<192x128xbf16>, vector<16x128xf32> -> vector<16x128xf32>
    %c2_100 = arith.constant 2 : index
    %c0_101 = arith.constant 0 : index
    %193 = vector.load %arg2[%c2_100, %c0_101] : memref<6x128xf32, #tpu.memory_space<vmem>>, vector<1x128xf32>
    %194 = vector.broadcast %193 : vector<1x128xf32> to vector<16x128xf32>
    %195 = arith.addf %192, %194 : vector<16x128xf32>
    %cst_102 = arith.constant 0.000000e+00 : f32
    %196 = vector.broadcast %cst_102 : f32 to vector<16x128xf32>
    %197 = arith.cmpf oge, %195, %196 : vector<16x128xf32>
    %cst_103 = arith.constant 0.00999999977 : f32
    %198 = vector.broadcast %cst_103 : f32 to vector<16x128xf32>
    %199 = arith.mulf %198, %195 : vector<16x128xf32>
    %200 = arith.select %197, %195, %199 : vector<16x128xi1>, vector<16x128xf32>
    %201 = tpu.iota {dimensions = array<i32: 0>} : vector<16x1xi32>
    %c8_i32_104 = arith.constant 8 : i32
    %c0_i32_105 = arith.constant 0 : i32
    %202 = arith.cmpi eq, %c8_i32_104, %c0_i32_105 : i32
    %c1_i32_106 = arith.constant 1 : i32
    %203 = arith.select %202, %c1_i32_106, %c8_i32_104 : i32
    %204 = vector.broadcast %203 : i32 to vector<16x1xi32>
    %205 = arith.remsi %201, %204 : vector<16x1xi32>
    %c0_i32_107 = arith.constant 0 : i32
    %206 = vector.broadcast %c0_i32_107 : i32 to vector<16x1xi32>
    %207 = arith.cmpi ne, %205, %206 : vector<16x1xi32>
    %c0_i32_108 = arith.constant 0 : i32
    %208 = vector.broadcast %c0_i32_108 : i32 to vector<16x1xi32>
    %209 = arith.cmpi slt, %205, %208 : vector<16x1xi32>
    %c0_i32_109 = arith.constant 0 : i32
    %210 = arith.cmpi slt, %203, %c0_i32_109 : i32
    %211 = vector.broadcast %210 : i1 to vector<16x1xi1>
    %212 = vector.broadcast %211 : vector<16x1xi1> to vector<16x1xi1>
    %213 = arith.xori %209, %212 : vector<16x1xi1>
    %214 = arith.andi %213, %207 : vector<16x1xi1>
    %215 = vector.broadcast %203 : i32 to vector<16x1xi32>
    %216 = arith.addi %205, %215 : vector<16x1xi32>
    %217 = arith.select %214, %216, %205 : vector<16x1xi1>, vector<16x1xi32>
    %c7_i32_110 = arith.constant 7 : i32
    %218 = vector.broadcast %c7_i32_110 : i32 to vector<16x1xi32>
    %219 = arith.cmpi eq, %217, %218 : vector<16x1xi32>
    %cst_111 = arith.constant 0.000000e+00 : f32
    %220 = vector.shape_cast %219 : vector<16x1xi1> to vector<16x1xi1>
    %221 = vector.broadcast %220 : vector<16x1xi1> to vector<16x128xi1>
    %222 = vector.broadcast %cst_111 : f32 to vector<16x128xf32>
    %223 = arith.select %221, %222, %200 : vector<16x128xi1>, vector<16x128xf32>
    %c8_i32_112 = arith.constant 8 : i32
    %c0_i32_113 = arith.constant 0 : i32
    %224 = arith.cmpi eq, %c8_i32_112, %c0_i32_113 : i32
    %c1_i32_114 = arith.constant 1 : i32
    %225 = arith.select %224, %c1_i32_114, %c8_i32_112 : i32
    %226 = vector.broadcast %225 : i32 to vector<16x1xi32>
    %227 = arith.remsi %201, %226 : vector<16x1xi32>
    %c0_i32_115 = arith.constant 0 : i32
    %228 = vector.broadcast %c0_i32_115 : i32 to vector<16x1xi32>
    %229 = arith.cmpi ne, %227, %228 : vector<16x1xi32>
    %c0_i32_116 = arith.constant 0 : i32
    %230 = vector.broadcast %c0_i32_116 : i32 to vector<16x1xi32>
    %231 = arith.cmpi slt, %227, %230 : vector<16x1xi32>
    %c0_i32_117 = arith.constant 0 : i32
    %232 = arith.cmpi slt, %225, %c0_i32_117 : i32
    %233 = vector.broadcast %232 : i1 to vector<16x1xi1>
    %234 = vector.broadcast %233 : vector<16x1xi1> to vector<16x1xi1>
    %235 = arith.xori %231, %234 : vector<16x1xi1>
    %236 = arith.andi %235, %229 : vector<16x1xi1>
    %237 = vector.broadcast %225 : i32 to vector<16x1xi32>
    %238 = arith.addi %227, %237 : vector<16x1xi32>
    %239 = arith.select %236, %238, %227 : vector<16x1xi1>, vector<16x1xi32>
    %c0_i32_118 = arith.constant 0 : i32
    %240 = vector.broadcast %c0_i32_118 : i32 to vector<16x1xi32>
    %241 = arith.cmpi eq, %239, %240 : vector<16x1xi32>
    %cst_119 = arith.constant 0.000000e+00 : f32
    %242 = vector.shape_cast %241 : vector<16x1xi1> to vector<16x1xi1>
    %243 = vector.broadcast %242 : vector<16x1xi1> to vector<16x128xi1>
    %244 = vector.broadcast %cst_119 : f32 to vector<16x128xf32>
    %245 = arith.select %243, %244, %200 : vector<16x128xi1>, vector<16x128xf32>
    %c2_120 = arith.constant 2 : index
    %c0_121 = arith.constant 0 : index
    %246 = vector.load %arg16[%c2_120, %c0_121] : memref<18x384xf32, #tpu.memory_space<vmem>>, vector<16x128xf32>
    tpu.vector_store %arg16[%c2_120, %c0_121], %223 {strides = array<i32>} : memref<18x384xf32, #tpu.memory_space<vmem>>, vector<16x128xf32>,
    %c1_122 = arith.constant 1 : index
    %c128_123 = arith.constant 128 : index
    %247 = vector.load %arg16[%c1_122, %c128_123] : memref<18x384xf32, #tpu.memory_space<vmem>>, vector<16x128xf32>
    tpu.vector_store %arg16[%c1_122, %c128_123], %200 {strides = array<i32>} : memref<18x384xf32, #tpu.memory_space<vmem>>, vector<16x128xf32>,
    %c0_124 = arith.constant 0 : index
    %c256_125 = arith.constant 256 : index
    %248 = vector.load %arg16[%c0_124, %c256_125] : memref<18x384xf32, #tpu.memory_space<vmem>>, vector<16x128xf32>
    tpu.vector_store %arg16[%c0_124, %c256_125], %245 {strides = array<i32>} : memref<18x384xf32, #tpu.memory_space<vmem>>, vector<16x128xf32>,
    %cst_126 = arith.constant 0.000000e+00 : f32
    %249 = vector.broadcast %cst_126 : f32 to vector<1x128xf32>
    %c1_127 = arith.constant 1 : index
    %c0_128 = arith.constant 0 : index
    %250 = vector.load %arg16[%c1_127, %c0_128] : memref<18x384xf32, #tpu.memory_space<vmem>>, vector<1x128xf32>
    tpu.vector_store %arg16[%c1_127, %c0_128], %249 {strides = array<i32>} : memref<18x384xf32, #tpu.memory_space<vmem>>, vector<1x128xf32>,
    %c16_129 = arith.constant 16 : index
    %c256_130 = arith.constant 256 : index
    %251 = vector.load %arg16[%c16_129, %c256_130] : memref<18x384xf32, #tpu.memory_space<vmem>>, vector<1x128xf32>
    tpu.vector_store %arg16[%c16_129, %c256_130], %249 {strides = array<i32>} : memref<18x384xf32, #tpu.memory_space<vmem>>, vector<1x128xf32>,
    %c1_131 = arith.constant 1 : index
    %c0_132 = arith.constant 0 : index
    %252 = vector.load %arg16[%c1_131, %c0_132] : memref<18x384xf32, #tpu.memory_space<vmem>>, vector<16x384xf32>
    %253 = arith.truncf %252 : vector<16x384xf32> to vector<16x384xbf16>
    %c0_133 = arith.constant 0 : index
    %c0_134 = arith.constant 0 : index
    %254 = vector.load %arg6[%c0_133, %c0_134] : memref<384x128xbf16, #tpu.memory_space<vmem>>, vector<384x128xbf16>
    %cst_135 = arith.constant dense<0.000000e+00> : vector<16x128xf32>
    %255 = tpu.matmul %253, %254, %cst_135 {dimension_numbers = #tpu.dot_dimension_numbers<[1], [0], [0], [1], [0, 0, 1, 1], [], []>} : vector<16x384xbf16>, vector<384x128xbf16>, vector<16x128xf32> -> vector<16x128xf32>
    %c3 = arith.constant 3 : index
    %c0_136 = arith.constant 0 : index
    %256 = vector.load %arg2[%c3, %c0_136] : memref<6x128xf32, #tpu.memory_space<vmem>>, vector<1x128xf32>
    %257 = vector.broadcast %256 : vector<1x128xf32> to vector<16x128xf32>
    %258 = arith.addf %255, %257 : vector<16x128xf32>
    %cst_137 = arith.constant 0.000000e+00 : f32
    %259 = vector.broadcast %cst_137 : f32 to vector<16x128xf32>
    %260 = arith.cmpf oge, %258, %259 : vector<16x128xf32>
    %cst_138 = arith.constant 0.00999999977 : f32
    %261 = vector.broadcast %cst_138 : f32 to vector<16x128xf32>
    %262 = arith.mulf %261, %258 : vector<16x128xf32>
    %263 = arith.select %260, %258, %262 : vector<16x128xi1>, vector<16x128xf32>
    %c0_139 = arith.constant 0 : index
    %c0_140 = arith.constant 0 : index
    %264 = vector.load %arg17[%c0_139, %c0_140] : memref<16x128xf32, #tpu.memory_space<vmem>>, vector<16x128xf32>
    tpu.vector_store %arg17[%c0_139, %c0_140], %263 {strides = array<i32>} : memref<16x128xf32, #tpu.memory_space<vmem>>, vector<16x128xf32>,
    %c0_141 = arith.constant 0 : index
    %c0_142 = arith.constant 0 : index
    %265 = tpu.strided_load %arg17[%c0_141, %c0_142] {strides = array<i32: 2, 1>} : memref<16x128xf32, #tpu.memory_space<vmem>>, vector<8x128xf32>
    %c1_143 = arith.constant 1 : index
    %c0_144 = arith.constant 0 : index
    %266 = tpu.strided_load %arg17[%c1_143, %c0_144] {strides = array<i32: 2, 1>} : memref<16x128xf32, #tpu.memory_space<vmem>>, vector<8x128xf32>
    %267 = arith.maximumf %265, %266 : vector<8x128xf32>
    %268 = vector.extract_strided_slice %267 {offsets = [0, 16], sizes = [8, 112], strides = [1, 1]} : vector<8x128xf32> to vector<8x112xf32>
    %269 = vector.extract_strided_slice %267 {offsets = [0, 0], sizes = [8, 16], strides = [1, 1]} : vector<8x128xf32> to vector<8x16xf32>
    %270 = tpu.concatenate %268, %269 in 1 : vector<8x112xf32>, vector<8x16xf32> -> vector<8x128xf32>
    %271 = arith.maximumf %267, %270 : vector<8x128xf32>
    %272 = arith.truncf %271 : vector<8x128xf32> to vector<8x128xbf16>
    %c0_145 = arith.constant 0 : index
    %c0_146 = arith.constant 0 : index
    %273 = vector.load %arg8[%c0_145, %c0_146] : memref<128x64xbf16, #tpu.memory_space<vmem>>, vector<128x64xbf16>
    %cst_147 = arith.constant dense<0.000000e+00> : vector<8x64xf32>
    %274 = tpu.matmul %272, %273, %cst_147 {dimension_numbers = #tpu.dot_dimension_numbers<[1], [0], [0], [1], [0, 0, 1, 1], [], []>} : vector<8x128xbf16>, vector<128x64xbf16>, vector<8x64xf32> -> vector<8x64xf32>
    %c0_148 = arith.constant 0 : index
    %c0_149 = arith.constant 0 : index
    %275 = vector.load %arg18[%c0_148, %c0_149] : memref<8x64xf32, #tpu.memory_space<vmem>>, vector<8x64xf32>
    tpu.vector_store %arg18[%c0_148, %c0_149], %274 {strides = array<i32>} : memref<8x64xf32, #tpu.memory_space<vmem>>, vector<8x64xf32>,
    %c0_150 = arith.constant 0 : index
    %c0_151 = arith.constant 0 : index
    %276 = tpu.strided_load %arg18[%c0_150, %c0_151] {strides = array<i32: 4, 1>} : memref<8x64xf32, #tpu.memory_space<vmem>>, vector<2x64xf32>
    %c1_152 = arith.constant 1 : index
    %c0_153 = arith.constant 0 : index
    %277 = tpu.strided_load %arg18[%c1_152, %c0_153] {strides = array<i32: 4, 1>} : memref<8x64xf32, #tpu.memory_space<vmem>>, vector<2x64xf32>
    %c2_154 = arith.constant 2 : index
    %c0_155 = arith.constant 0 : index
    %278 = tpu.strided_load %arg18[%c2_154, %c0_155] {strides = array<i32: 4, 1>} : memref<8x64xf32, #tpu.memory_space<vmem>>, vector<2x64xf32>
    %c3_156 = arith.constant 3 : index
    %c0_157 = arith.constant 0 : index
    %279 = tpu.strided_load %arg18[%c3_156, %c0_157] {strides = array<i32: 4, 1>} : memref<8x64xf32, #tpu.memory_space<vmem>>, vector<2x64xf32>
    %280 = tpu.concatenate %276, %277, %278, %279 in 1 : vector<2x64xf32>, vector<2x64xf32>, vector<2x64xf32>, vector<2x64xf32> -> vector<2x256xf32>
    %281 = arith.truncf %280 : vector<2x256xf32> to vector<2x256xbf16>
    %c0_158 = arith.constant 0 : index
    %c0_159 = arith.constant 0 : index
    %282 = vector.load %arg9[%c0_158, %c0_159] : memref<256x64xbf16, #tpu.memory_space<vmem>>, vector<256x64xbf16>
    %cst_160 = arith.constant dense<0.000000e+00> : vector<2x64xf32>
    %283 = tpu.matmul %281, %282, %cst_160 {dimension_numbers = #tpu.dot_dimension_numbers<[1], [0], [0], [1], [0, 0, 1, 1], [], []>} : vector<2x256xbf16>, vector<256x64xbf16>, vector<2x64xf32> -> vector<2x64xf32>
    %c4 = arith.constant 4 : index
    %c0_161 = arith.constant 0 : index
    %284 = vector.load %arg2[%c4, %c0_161] : memref<6x128xf32, #tpu.memory_space<vmem>>, vector<1x64xf32>
    %285 = vector.broadcast %284 : vector<1x64xf32> to vector<2x64xf32>
    %286 = arith.addf %283, %285 : vector<2x64xf32>
    %cst_162 = arith.constant 0.000000e+00 : f32
    %287 = vector.broadcast %cst_162 : f32 to vector<2x64xf32>
    %288 = arith.cmpf oge, %286, %287 : vector<2x64xf32>
    %cst_163 = arith.constant 0.00999999977 : f32
    %289 = vector.broadcast %cst_163 : f32 to vector<2x64xf32>
    %290 = arith.mulf %289, %286 : vector<2x64xf32>
    %291 = arith.select %288, %286, %290 : vector<2x64xi1>, vector<2x64xf32>
    %292 = arith.truncf %291 : vector<2x64xf32> to vector<2x64xbf16>
    %c0_164 = arith.constant 0 : index
    %c0_165 = arith.constant 0 : index
    %293 = vector.load %arg10[%c0_164, %c0_165] : memref<64x64xbf16, #tpu.memory_space<vmem>>, vector<64x64xbf16>
    %cst_166 = arith.constant dense<0.000000e+00> : vector<2x64xf32>
    %294 = tpu.matmul %292, %293, %cst_166 {dimension_numbers = #tpu.dot_dimension_numbers<[1], [0], [0], [1], [0, 0, 1, 1], [], []>} : vector<2x64xbf16>, vector<64x64xbf16>, vector<2x64xf32> -> vector<2x64xf32>
    %c5 = arith.constant 5 : index
    %c0_167 = arith.constant 0 : index
    %295 = vector.load %arg2[%c5, %c0_167] : memref<6x128xf32, #tpu.memory_space<vmem>>, vector<1x64xf32>
    %296 = vector.broadcast %295 : vector<1x64xf32> to vector<2x64xf32>
    %297 = arith.addf %294, %296 : vector<2x64xf32>
    %c0_168 = arith.constant 0 : index
    %c0_169 = arith.constant 0 : index
    %298 = vector.load %arg11[%c0_168, %c0_169] : memref<2x64xf32, #tpu.memory_space<vmem>>, vector<2x64xf32>
    tpu.vector_store %arg11[%c0_168, %c0_169], %297 {strides = array<i32>} : memref<2x64xf32, #tpu.memory_space<vmem>>, vector<2x64xf32>,
    return
  }
  func.func @transform_0(%arg0: i32) -> (i32, i32) {
    %c0_i32 = arith.constant 0 : i32
    %c0_i32_0 = arith.constant 0 : i32
    return %arg0, %c0_i32 : i32, i32
  }
  func.func @transform_1(%arg0: i32) -> (i32, i32) {
    %c0_i32 = arith.constant 0 : i32
    %c0_i32_0 = arith.constant 0 : i32
    %c0_i32_1 = arith.constant 0 : i32
    return %c0_i32, %c0_i32_0 : i32, i32
  }
  func.func @transform_2(%arg0: i32) -> (i32, i32) {
    %c0_i32 = arith.constant 0 : i32
    %c0_i32_0 = arith.constant 0 : i32
    %c0_i32_1 = arith.constant 0 : i32
    return %c0_i32, %c0_i32_0 : i32, i32
  }
  func.func @transform_3(%arg0: i32) -> (i32, i32) {
    %c0_i32 = arith.constant 0 : i32
    %c0_i32_0 = arith.constant 0 : i32
    %c0_i32_1 = arith.constant 0 : i32
    return %c0_i32, %c0_i32_0 : i32, i32
  }
  func.func @transform_4(%arg0: i32) -> (i32, i32) {
    %c0_i32 = arith.constant 0 : i32
    %c0_i32_0 = arith.constant 0 : i32
    %c0_i32_1 = arith.constant 0 : i32
    return %c0_i32, %c0_i32_0 : i32, i32
  }
  func.func @transform_5(%arg0: i32) -> (i32, i32) {
    %c0_i32 = arith.constant 0 : i32
    %c0_i32_0 = arith.constant 0 : i32
    %c0_i32_1 = arith.constant 0 : i32
    return %c0_i32, %c0_i32_0 : i32, i32
  }
  func.func @transform_6(%arg0: i32) -> (i32, i32) {
    %c0_i32 = arith.constant 0 : i32
    %c0_i32_0 = arith.constant 0 : i32
    %c0_i32_1 = arith.constant 0 : i32
    return %c0_i32, %c0_i32_0 : i32, i32
  }
  func.func @transform_7(%arg0: i32) -> (i32, i32) {
    %c0_i32 = arith.constant 0 : i32
    %c0_i32_0 = arith.constant 0 : i32
    %c0_i32_1 = arith.constant 0 : i32
    return %c0_i32, %c0_i32_0 : i32, i32
  }
  func.func @transform_8(%arg0: i32) -> (i32, i32) {
    %c0_i32 = arith.constant 0 : i32
    %c0_i32_0 = arith.constant 0 : i32
    %c0_i32_1 = arith.constant 0 : i32
    return %c0_i32, %c0_i32_0 : i32, i32
  }
  func.func @transform_9(%arg0: i32) -> (i32, i32) {
    %c0_i32 = arith.constant 0 : i32
    %c0_i32_0 = arith.constant 0 : i32
    %c0_i32_1 = arith.constant 0 : i32
    return %c0_i32, %c0_i32_0 : i32, i32
  }
  func.func @transform_10(%arg0: i32) -> (i32, i32) {
    %c0_i32 = arith.constant 0 : i32
    %c0_i32_0 = arith.constant 0 : i32
    return %arg0, %c0_i32 : i32, i32
  }
}

</mosaic_0001>

<bundles_post_ra>
// kernel: tile.23
= control target key start
LH: loop header
LB: loop body
LE: loop exit
PB: predicated region body
PF: predicated region fallthrough
CT: control target
= control target key end

     0   :  { %s28_s0 = inlined_call_operand.vmem [shape: f32[8], index: 0, kind: input, shape index: {}]   ;;  %s29_s1 = inlined_call_operand.vmem [shape: f32[16,8], index: 1, kind: output, shape index: {}]  }
   0x1   :  { %v4_v0 = vld [vmem:[%s28_s0] ss:$0 sm:$0xff] }
   0x2   :  { %5 = vst [vmem:[%s29_s1] sm:$0xff] %v4_v0  ;;  %8 = vst [vmem:[%s29_s1 + $0x8] sm:$0xff] %v4_v0 }

// kernel: tile.33
= control target key start
LH: loop header
LB: loop body
LE: loop exit
PB: predicated region body
PF: predicated region fallthrough
CT: control target
= control target key end

     0   :  { %s22_s0 = inlined_call_operand.vmem [shape: f32[16], index: 0, kind: input, shape index: {}]   ;;  %s23_s1 = inlined_call_operand.vmem [shape: f32[8,16], index: 1, kind: output, shape index: {}]  }
   0x1   :  { %v4_v0 = vld [vmem:[%s22_s0] ss:$0 sm:$0xff] }
   0x2   :  { %5 = vst [vmem:[%s23_s1] sm:$0xff] %v4_v0 }

// kernel: conv_encoder_forward.1
= control target key start
LH: loop header
LB: loop body
LE: loop exit
PB: predicated region body
PF: predicated region fallthrough
CT: control target
= control target key end

     0   :  { %v40_v0 = vlaneseq  ;;  %vm144_vm0 = vcmask 523264   ;;  %vm154_vm1 = vcmask 1040384   ;;  %v2474_v4 = vmov 0   ;;  %s2475_s23 = smov 64   ;;  %s2478_s28 = smov 120   ;;  %s3128_s0 = inlined_call_operand.vmem [shape: f32[32,64], index: 0, kind: input, shape index: {}]   ;;  %s3129_s2 = inlined_call_operand.vmem [shape: bf16[192,128], index: 2, kind: input, shape index: {}]   ;;  %s3130_s3 = inlined_call_operand.vmem [shape: bf16[384,128], index: 3, kind: input, shape index: {}]   ;;  %s3131_s1 = inlined_call_operand.vmem [shape: f32[6,128], index: 1, kind: input, shape index: {}]   ;;  %s3132_s6 = inlined_call_operand.vmem [shape: bf16[128,64], index: 6, kind: input, shape index: {}]   ;;  %s3133_s4 = inlined_call_operand.vmem [shape: bf16[192,128], index: 4, kind: input, shape index: {}]   ;;  %s3134_s5 = inlined_call_operand.vmem [shape: bf16[384,128], index: 5, kind: input, shape index: {}]   ;;  %s3135_s7 = inlined_call_operand.vmem [shape: bf16[128,64], index: 7, kind: input, shape index: {}]   ;;  %s3136_s8 = inlined_call_operand.vmem [shape: bf16[256,64], index: 8, kind: input, shape index: {}]   ;;  %s3137_s9 = inlined_call_operand.vmem [shape: bf16[64,64], index: 9, kind: input, shape index: {}]   ;;  %s3138_s10 = inlined_call_operand.vmem [shape: f32[2,64], index: 10, kind: output, shape index: {}]  }
   0x1   :  { %v2538_v1 = vld [vmem:[%s3128_s0] sm:$0xff]  ;;  %v37_v2 = vld [vmem:[%s3128_s0 + $0x8] sm:$0xff]  ;;  %v2546_v3 = vld [vmem:[%s3128_s0 + $0x10] sm:$0xff]  ;;  %358 = vmatprep.subr.bf16.mxu0 %v2474_v4  ;;  %vm142_vm5 = vcmask 523266   ;;  %vm189_vm6 = vcmask 516096   ;;  %v2476_v29 = vmov 0.0  }
   0x2   :  { %v2549_v5 = vshrl.u32 %v40_v0, 7  ;;  %v155_v6 = vrot.slane %v2538_v1, 7  ;;  %v156_v7 = vrot.slane %v37_v2, 7  ;;  %v158_v8 = vrot.slane %v2546_v3, 7  ;;  %186 = vst.msk [vmem:[#allocation2 + $0x18] sm:$0xff] %vm144_vm0, %v37_v2  ;;  %v2557_v9 = vld [vmem:[%s3128_s0 + $0x18] sm:$0xff] }
   0x3   :  { %v2366_v10 = vld [vmem:[%s3129_s2 + $0x38] sm:$0xff]   ;;  %v160_v11 = vrot.slane %v2557_v9, 7  ;;  %188 = vst.msk [vmem:[#allocation2 + $0x38] sm:$0xff] %vm144_vm0, %v2557_v9  ;;  %v2367_v16 = vld [vmem:[%s3129_s2 + $0x30] sm:$0xff]   ;;  %v2368_v23 = vld [vmem:[%s3129_s2 + $0x28] sm:$0xff]   ;;  %v130_v28 = vrot.slane %v2538_v1, 6 }
   0x4   :  { %v49_v12 = vand.u32 15, %v2549_v5  ;;  %162 = vrot.lane.b32.xlu0 %v155_v6, %s2475_s23  ;;  %v2568_v13 = vadd.s32 8, %v2549_v5  ;;  %v43_v14 = vadd.s32 16, %v2549_v5  ;;  %v159_v15 = vsel %vm154_vm1, %v156_v7, %v158_v8  ;;  %359 = vmatpush1.bf16.msra.mxu0 %v2366_v10  ;;  %191 = vst.msk [vmem:[#allocation2 + $0x48] sm:$0x1] %vm189_vm6, %v2476_v29  ;;  %v2369_v32 = vld [vmem:[%s3129_s2 + $0x20] sm:$0xff]  }
   0x5   :  { %166 = vrot.lane.b32.xlu1 %v159_v15, %s2475_s23  ;;  %v157_v17 = vsel %vm154_vm1, %v155_v6, %v156_v7  ;;  %360 = vmatprep.subr.bf16.mxu0 %v2474_v4  ;;  %v161_v21 = vsel %vm154_vm1, %v158_v8, %v160_v11  ;;  %1072 = vst.msk [vmem:[#allocation5 + $0x28] sm:$0x1] %vm189_vm6, %v2476_v29  ;;  %473 = vst [vmem:[#allocation3 + $0x1] sm:$0x1] %v2476_v29  ;;  %vm129_vm7 = vcmask 1041408   ;;  %v133_v30 = vrot.slane %v2546_v3, 6 }
   0x6   :  { %vm2578_vm2 = vcmp.eq.s32.totalorder %v49_v12, 0  ;;  %v56_v19 = vand.u32 15, %v2568_v13  ;;  %v63_v20 = vand.u32 15, %v43_v14  ;;  %474 = vst [vmem:[#allocation3 + $0x70] sm:$0x1] %v2476_v29  ;;  %v44_v33 = vadd.s32 24, %v2549_v5 }
   0x7   :  { %v121_v22 = vsel %vm2578_vm2, 0.0, %v2538_v1  ;;  %1287 = vst [vmem:[#allocation6 + $0x1] sm:$0x1] %v2476_v29  ;;  %1288 = vst [vmem:[#allocation6 + $0x40] sm:$0x1] %v2476_v29  ;;  %v2370_v37 = vld [vmem:[%s3129_s2 + $0x18] sm:$0xff]  }
   0x8   :  { %185 = vst.msk [vmem:[#allocation2 + $0x8] sm:$0xff] %vm144_vm0, %v121_v22  ;;  %vm2591_vm3 = vcmp.eq.s32.totalorder %v56_v19, 15  ;;  %vm2595_vm4 = vcmp.eq.s32.totalorder %v63_v20, 0  ;;  %164 = vrot.lane.b32.xlu0 %v157_v17, %s2475_s23  ;;  %361 = vmatpush1.bf16.msra.mxu0 %v2367_v16  ;;  %v70_v36 = vand.u32 15, %v44_v33  ;;  %vm148_vm9 = vcmask 517120   ;;  %v2371_v47 = vld [vmem:[%s3129_s2 + $0x10] sm:$0xff]  }
   0x9   :  { %v123_v26 = vsel %vm2595_vm4, 0.0, %v2546_v3  ;;  %v106_v27 = vsel %vm2591_vm3, 0.0, %v37_v2  ;;  %168 = vrot.lane.b32.xlu1 %v161_v21, %s2475_s23  ;;  %362 = vmatprep.subr.bf16.mxu0 %v2474_v4  ;;  %143 = vst.msk [vmem:[#allocation2] sm:$0xfc] %vm142_vm5, %v130_v28  ;;  %v195_v41 = vld [vmem:[#allocation2 + $0x18] sm:$0xff]  ;;  %v2372_v55 = vld [vmem:[%s3129_s2 + $0x8] sm:$0xff]  }
   0xa   :  { %187 = vst.msk [vmem:[#allocation2 + $0x28] sm:$0xff] %vm144_vm0, %v123_v26  ;;  %v131_v31 = vrot.slane %v106_v27, 6  ;;  %vm2632_vm8 = vcmp.eq.s32.totalorder %v70_v36, 15  ;;  %v199_v43 = vld [vmem:[#allocation2 + $0x38] sm:$0xff]  ;;  %vm237_vm10 = vsmask.f32 7424 }
   0xb   :  { %v108_v40 = vsel %vm2632_vm8, 0.0, %v2557_v9  ;;  %v2373_v59 = vld [vmem:[%s3129_s2] sm:$0xff]   ;;  %v2374_v60 = vld [vmem:[%s3129_s2 + $0x58] sm:$0xff]   ;;  %v2375_v61 = vld [vmem:[%s3129_s2 + $0x50] sm:$0xff]   ;;  %vm177_vm11 = vcmask 1048065   ;;  %vm179_vm12 = vcmask 1048064  }
   0xc   :  { %170 = vrot.lane.b32.xlu0 %v160_v11, %s2475_s23  ;;  %363 = vmatpush1.bf16.msra.mxu0 %v2368_v23  ;;  %v134_v34 = vsel %vm129_vm7, %v131_v31, %v133_v30  ;;  %v132_v35 = vsel %vm129_vm7, %v130_v28, %v131_v31  ;;  %v135_v44 = vrot.slane %v108_v40, 6  ;;  %v2376_v62 = vld [vmem:[%s3129_s2 + $0x48] sm:$0xff]   ;;  %v2377_v63 = vld [vmem:[%s3129_s2 + $0x40] sm:$0xff]   ;;  %vm183_vm13 = vcmask 1040896   ;;  %v2380_v40 = vld [vmem:[%s3130_s3 + $0x70] sm:$0xff]   ;;  %s2479_s25 = smov 112  }
   0xd   :  { %364 = vmatprep.subr.bf16.mxu0 %v2474_v4  ;;  %146 = vst.msk [vmem:[#allocation2 + $0x20] sm:$0xff] %vm144_vm0, %v134_v34  ;;  %145 = vst.msk [vmem:[#allocation2 + $0x10] sm:$0xff] %vm144_vm0, %v132_v35  ;;  %v201_v6 = vld [vmem:[#allocation2 + $0x48] sm:$0x1] }
   0xe   :  { %v136_v48 = vsel %vm129_vm7, %v133_v30, %v135_v44  ;;  %149 = vst.msk [vmem:[#allocation2 + $0x40] sm:$0x3] %vm148_vm9, %v135_v44  ;;  %v207_v8 = vpack.c.bf16 %v201_v6, %v201_v6  ;;  %v2384_v44 = vld [vmem:[%s3130_s3 + $0x60] sm:$0xff]  }
   0xf   :  { %v193_v39 = vld [vmem:[#allocation2 + $0x8] sm:$0xfe]  ;;  %147 = vst.msk [vmem:[#allocation2 + $0x30] sm:$0xff] %vm144_vm0, %v136_v48  ;;  %v2388_v48 = vld [vmem:[%s3130_s3 + $0x50] sm:$0xff]  }
  0x10   :  { %365 = vmatpush1.bf16.msra.mxu0 %v2369_v32  ;;  %v203_v45 = vpack.c.bf16 %v195_v41, %v193_v39  ;;  %v274_v11 = vshll.u32 %v207_v8, 16  ;;  %v2379_v39 = vld [vmem:[%s3130_s3 + $0x38] sm:$0xff]   ;;  %v2381_v41 = vld [vmem:[%s3130_s3 + $0x30] sm:$0xff]  }
  0x11   :  { %366 = vmatprep.subr.bf16.mxu0 %v2474_v4  ;;  %v197_v42 = vld [vmem:[#allocation2 + $0x28] sm:$0xff] }
  0x12   :  { %v205_v46 = vpack.c.bf16 %v199_v43, %v197_v42  ;;  %v251_v49 = vshrl.u32 %v203_v45, 16  ;;  %v253_v50 = vshll.u32 %v203_v45, 16  ;;  %v276_v20 = vrot.slane %v274_v11, 1  ;;  %v2382_v42 = vld [vmem:[%s3130_s3 + $0x68] sm:$0xff]   ;;  %v2385_v45 = vld [vmem:[%s3130_s3 + $0x20] sm:$0xff]  }
  0x13   :  { %v2383_v43 = vld [vmem:[%s3130_s3 + $0x28] sm:$0xff]  }
  0x14   :  { %367 = vmatpush1.bf16.msra.mxu0 %v2370_v37  ;;  %v258_v51 = vshll.u32 %v205_v46, 16  ;;  %v270_v52 = vshrl.u32 %v205_v46, 16  ;;  %v255_v53 = vrot.slane %v253_v50, 1  ;;  %v2378_v37 = vld [vmem:[%s3130_s3 + $0x78] sm:$0xff]   ;;  %v2390_v50 = vld [vmem:[%s3130_s3 + $0x48] sm:$0xff]  }
  0x15   :  { %368 = vmatprep.subr.bf16.mxu0 %v2474_v4  ;;  %2144 = vmatprep.subr.bf16.mxu1 %v2378_v37  ;;  %v2386_v46 = vld [vmem:[%s3130_s3 + $0x58] sm:$0xff]  }
  0x16   :  { %v260_v54 = vrot.slane %v258_v51, 1  ;;  %v256_v56 = vor.u32 %v255_v53, %v251_v49  ;;  %2145 = vmatpush3.bf16.msra.mxu1 %v2379_v39  ;;  %v2389_v49 = vld [vmem:[%s3130_s3 + $0x10] sm:$0xff]   ;;  %v2391_v51 = vld [vmem:[%s3130_s3 + $0x8] sm:$0xff]   ;;  %v2393_v53 = vld [vmem:[%s3130_s3] sm:$0xff]  }
  0x17   :  { %2146 = vmatprep.subr.bf16.mxu1 %v2380_v40 }
  0x18   :  { %369 = vmatpush1.bf16.msra.mxu0 %v2371_v47  ;;  %v272_v57 = vor.u32 %v270_v52, %v260_v54  ;;  %v261_v58 = vsel %vm237_vm10, %v256_v56, %v260_v54  ;;  %v2387_v47 = vld [vmem:[%s3130_s3 + $0x18] sm:$0xff]   ;;  %v2392_v52 = vld [vmem:[%s3130_s3 + $0x40] sm:$0xff]  }
  0x19   :  { %370 = vmatprep.subr.bf16.mxu0 %v2474_v4  ;;  %2039 = vmatprep.mubr.msk.bf16.mxu0 %vm144_vm0, %v261_v58  ;;  %v2736_v54 = vld [vmem:[%s3130_s3 + $0xb8] sm:$0xff]  }
  0x1a   :  { %v277_v30 = vsel %vm237_vm10, %v272_v57, %v276_v20  ;;  %2147 = vmatpush3.bf16.msra.mxu1 %v2381_v41 }
  0x1b   :  { %2148 = vmatprep.subr.bf16.mxu1 %v2382_v42 }
  0x1c   :  { %371 = vmatpush1.bf16.msra.mxu0 %v2372_v55  ;;  %v2026_v55 = vld [vmem:[%s3131_s1] ss:$0 sm:$0xff] }
  0x1d   :  { %372 = vmatprep.subr.bf16.mxu0 %v2474_v4 }
  0x1e   :  { %2149 = vmatpush3.bf16.msra.mxu1 %v2383_v43 }
  0x1f   :  { %2150 = vmatprep.subr.bf16.mxu1 %v2384_v44 }
  0x20   :  { %373 = vmatpush1.bf16.msra.mxu0 %v2373_v59 }
  0x21   :  { %382 = vmatprep.subr.bf16.mxu0 %v2474_v4 }
  0x22   :  { %2151 = vmatpush3.bf16.msra.mxu1 %v2385_v45 }
  0x23   :  { %2152 = vmatprep.subr.bf16.mxu1 %v2386_v46 }
  0x24   :  { %383 = vmatpush2.bf16.msra.mxu0 %v2374_v60 }
  0x25   :  { %384 = vmatprep.subr.bf16.mxu0 %v2474_v4 }
  0x26   :  { %2153 = vmatpush3.bf16.msra.mxu1 %v2387_v47 }
  0x27   :  { %2154 = vmatprep.subr.bf16.mxu1 %v2388_v48 }
  0x28   :  { %385 = vmatpush2.bf16.msra.mxu0 %v2375_v61 }
  0x29   :  { %386 = vmatprep.subr.bf16.mxu0 %v2474_v4 }
  0x2a   :  { %2155 = vmatpush3.bf16.msra.mxu1 %v2389_v49 }
  0x2b   :  { %2156 = vmatprep.subr.bf16.mxu1 %v2390_v50 }
  0x2c   :  { %387 = vmatpush2.bf16.msra.mxu0 %v2376_v62 }
  0x2d   :  { %388 = vmatprep.subr.bf16.mxu0 %v2474_v4 }
  0x2e   :  { %2157 = vmatpush3.bf16.msra.mxu1 %v2391_v51 }
  0x2f   :  { %2158 = vmatprep.subr.bf16.mxu1 %v2392_v52 }
  0x30   :  { %389 = vmatpush2.bf16.msra.mxu0 %v2377_v63 }
  0x31   :  { %2278 = vmatprep.subr.bf16.mxu0 %v2476_v29 }
  0x32   :  { %2159 = vmatpush3.bf16.msra.mxu1 %v2393_v53 }
  0x33   :  { %2258 = vmatprep.subr.bf16.mxu1 %v2736_v54 }
  0x76   :  { %v163_v0 = vpop.permute.xlu0 %162 }
  0x77   :  { %178 = vst.msk [vmem:[#allocation2] sm:$0xfe] %vm177_vm11, %v163_v0  ;;  %v167_v1 = vpop.permute.xlu1 %166 }
  0x78   :  { %190 = vst.msk [vmem:[#allocation2 + $0x1] sm:$0x1] %vm189_vm6, %v2476_v29 }
  0x79   :  { %181 = vst.msk [vmem:[#allocation2 + $0x20] sm:$0xff] %vm179_vm12, %v167_v1 }
  0x7a   :  { %v165_v2 = vpop.permute.xlu0 %164 }
  0x7b   :  { %180 = vst.msk [vmem:[#allocation2 + $0x10] sm:$0xff] %vm179_vm12, %v165_v2  ;;  %v169_v3 = vpop.permute.xlu1 %168 }
  0x7c   :  { %182 = vst.msk [vmem:[#allocation2 + $0x30] sm:$0xff] %vm179_vm12, %v169_v3 }
  0x7e   :  { %v171_v7 = vpop.permute.xlu0 %170 }
  0x7f   :  { %184 = vst.msk [vmem:[#allocation2 + $0x40] sm:$0x1] %vm183_vm13, %v171_v7  ;;  %v192_v9 = vld [vmem:[#allocation2] sm:$0xfe] }
  0x80   :  { %v196_v12 = vld [vmem:[#allocation2 + $0x20] sm:$0xff] }
  0x82   :  { %v194_v10 = vld [vmem:[#allocation2 + $0x10] sm:$0xff] }
  0x83   :  { %v198_v14 = vld [vmem:[#allocation2 + $0x30] sm:$0xff]  ;;  %v202_v15 = vpack.c.bf16 %v194_v10, %v192_v9 }
  0x84   :  { %v204_v16 = vpack.c.bf16 %v198_v14, %v196_v12 }
  0x85   :  { %v241_v17 = vshll.u32 %v202_v15, 16  ;;  %v239_v22 = vshrl.u32 %v202_v15, 16 }
  0x86   :  { %v246_v19 = vshll.u32 %v204_v16, 16  ;;  %v200_v21 = vld [vmem:[#allocation2 + $0x40] sm:$0x1]  ;;  %v262_v33 = vshrl.u32 %v204_v16, 16 }
  0x87   :  { %v243_v23 = vrot.slane %v241_v17, 1  ;;  %v206_v26 = vpack.c.bf16 %v200_v21, %v200_v21 }
  0x88   :  { %v248_v27 = vrot.slane %v246_v19, 1 }
  0x89   :  { %v244_v28 = vor.u32 %v243_v23, %v239_v22  ;;  %v266_v32 = vshll.u32 %v206_v26, 16 }
  0x8a   :  { %v264_v34 = vor.u32 %v262_v33, %v248_v27 }
  0x8b   :  { %v249_v31 = vsel %vm237_vm10, %v244_v28, %v248_v27  ;;  %v268_v35 = vrot.slane %v266_v32, 1 }
  0x8c   :  { %391 = vmatmul.mubr.bf16.vlgmr.msra.gmra.mxu0 %v249_v31 }
  0x8d   :  { %2040 = vmatprep.mubr.msk.bf16.mxu0 %vm144_vm0, %v277_v30  ;;  %v269_v36 = vsel %vm237_vm10, %v264_v34, %v268_v35 }
  0x94   :  { %399 = vmatmul.mubr.bf16.gmra.mxu0 %v269_v36 }
 0x14c   :  { %v392_v56 = vpop.f32.mrf.mxu0 }
 0x14d   :  { %v393_v57 = vadd.f32 %v2026_v55, %v392_v56 }
 0x14e   :  { %v394_v58 = vpop.f32.mrf.mxu0 }
 0x14f   :  { %vm407_vm14 = vcmp.ge.f32.partialorder %v393_v57, 0.0  ;;  %v411_v59 = vmul.f32 0.01, %v393_v57 }
 0x150   :  { %v395_v60 = vpop.f32.mrf.mxu0 }
 0x151   :  { %v415_v61 = vsel %vm407_vm14, %v393_v57, %v411_v59  ;;  %v396_v62 = vadd.f32 %v2026_v55, %v395_v60  ;;  %v2395_v59 = vld [vmem:[%s3130_s3 + $0xb0] sm:$0xff]  }
 0x152   :  { %v423_v63 = vsel %vm2578_vm2, 0.0, %v415_v61  ;;  %v431_v0 = vrot.slane %v415_v61, 6  ;;  %v452_v1 = vrot.slane %v415_v61, 7  ;;  %v397_v2 = vpop.f32.mrf.mxu0 }
 0x153   :  { %469 = vst [vmem:[#allocation3 + $0x10] sm:$0xff] %v423_v63  ;;  %vm408_vm15 = vcmp.ge.f32.partialorder %v396_v62, 0.0  ;;  %v412_v3 = vmul.f32 0.01, %v396_v62 }
 0x154   :  { %443 = vst [vmem:[#allocation3] sm:$0xfc] %v431_v0  ;;  %464 = vst [vmem:[#allocation3 + $0x8] sm:$0xfe] %v452_v1  ;;  %v400_v6 = vpop.f32.mrf.mxu0 }
 0x155   :  { %v416_v7 = vsel %vm408_vm15, %v396_v62, %v412_v3  ;;  %v401_v8 = vadd.f32 %v2026_v55, %v400_v6  ;;  %v2396_v6 = vld [vmem:[%s3130_s3 + $0xa8] sm:$0xff]  }
 0x156   :  { %v420_v9 = vsel %vm2591_vm3, 0.0, %v416_v7  ;;  %v453_v10 = vrot.slane %v416_v7, 7  ;;  %v402_v11 = vpop.f32.mrf.mxu0 }
 0x157   :  { %v432_v12 = vrot.slane %v420_v9, 6  ;;  %vm409_vm14 = vcmp.ge.f32.partialorder %v401_v8, 0.0  ;;  %v413_v18 = vmul.f32 0.01, %v401_v8 }
 0x158   :  { %v454_v14 = vsel %vm154_vm1, %v452_v1, %v453_v10  ;;  %v403_v15 = vpop.f32.mrf.mxu0 }
 0x159   :  { %v433_v16 = vsel %vm129_vm7, %v431_v0, %v432_v12  ;;  %v417_v17 = vsel %vm409_vm14, %v401_v8, %v413_v18  ;;  %v404_v19 = vadd.f32 %v2026_v55, %v403_v15  ;;  %vm2477_vm14 = vmmov 0  }
 0x15a   :  { %v425_v20 = vsel %vm2595_vm4, 0.0, %v417_v17  ;;  %v434_v21 = vrot.slane %v417_v17, 6  ;;  %v455_v22 = vrot.slane %v417_v17, 7  ;;  %v405_v23 = vpop.f32.mrf.mxu0  ;;  %v477_v36 = vld [vmem:[#allocation3 + $0x10] sm:$0xfe]  ;;  %2294 = vmatprep.mubr.msk.bf16.mxu0 %vm2477_vm14, %v2476_v29 }
 0x15b   :  { %vm410_vm2 = vcmp.ge.f32.partialorder %v404_v19, 0.0  ;;  %v414_v24 = vmul.f32 0.01, %v404_v19  ;;  %v476_v26 = vld [vmem:[#allocation3 + $0x8] sm:$0xfe]  ;;  %v492_v44 = vpack.c.bf16 %v416_v7, %v477_v36  ;;  %v2397_v17 = vld [vmem:[%s3130_s3 + $0xa0] sm:$0xff]  }
 0x15c   :  { %v435_v27 = vsel %vm129_vm7, %v432_v12, %v434_v21  ;;  %v456_v28 = vsel %vm154_vm1, %v453_v10, %v455_v22  ;;  %v491_v30 = vpack.c.bf16 %v454_v14, %v476_v26  ;;  %v475_v31 = vld [vmem:[#allocation3] sm:$0xfe]  ;;  %v2400_v23 = vld [vmem:[%s3130_s3 + $0x88] sm:$0xff]   ;;  %v2401_v26 = vld [vmem:[%s3130_s3 + $0x80] sm:$0xff]  }
 0x15d   :  { %v418_v32 = vsel %vm410_vm2, %v404_v19, %v414_v24  ;;  %v490_v33 = vpack.c.bf16 %v433_v16, %v475_v31  ;;  %v579_v53 = vshll.u32 %v492_v44, 16  ;;  %v577_v9 = vshrl.u32 %v492_v44, 16  ;;  %v2406_v36 = vld [vmem:[%s3132_s6 + $0x18] sm:$0xff]  }
 0x15e   :  { %v422_v34 = vsel %vm2632_vm8, 0.0, %v418_v32  ;;  %v457_v35 = vrot.slane %v418_v32, 7  ;;  %v567_v25 = vshll.u32 %v491_v30, 16  ;;  %v565_v47 = vshrl.u32 %v491_v30, 16 }
 0x15f   :  { %v436_v37 = vrot.slane %v422_v34, 6  ;;  %v555_v39 = vshll.u32 %v490_v33, 16  ;;  %v553_v38 = vshrl.u32 %v490_v33, 16  ;;  %v495_v52 = vpack.c.bf16 %v418_v32, %v425_v20  ;;  %v2398_v20 = vld [vmem:[%s3130_s3 + $0x98] sm:$0xff]   ;;  %v2403_v34 = vld [vmem:[%s3132_s6 + $0x30] sm:$0xff]  }
 0x160   :  { %v458_v40 = vsel %vm154_vm1, %v455_v22, %v457_v35  ;;  %468 = vst [vmem:[#allocation3 + $0x68] sm:$0x1] %v457_v35  ;;  %v569_v43 = vrot.slane %v567_v25, 1  ;;  %v581_v0 = vrot.slane %v579_v53, 1  ;;  %v489_v22 = vld [vmem:[#allocation3 + $0x70] sm:$0x1] }
 0x161   :  { %v437_v41 = vsel %vm129_vm7, %v434_v21, %v436_v37  ;;  %447 = vst [vmem:[#allocation3 + $0x60] sm:$0x3] %v436_v37  ;;  %v494_v42 = vpack.c.bf16 %v458_v40, %v456_v28  ;;  %v557_v46 = vrot.slane %v555_v39, 1  ;;  %v584_v1 = vshll.u32 %v495_v52, 16  ;;  %v2399_v21 = vld [vmem:[%s3130_s3 + $0x90] sm:$0xff]   ;;  %v2402_v33 = vld [vmem:[%s3132_s6 + $0x38] sm:$0xff]  }
 0x162   :  { %v493_v45 = vpack.c.bf16 %v437_v41, %v435_v27  ;;  %v570_v50 = vor.u32 %v569_v43, %v565_v47  ;;  %v582_v14 = vor.u32 %v581_v0, %v577_v9  ;;  %v498_v24 = vpack.c.bf16 %v489_v22, %v489_v22  ;;  %2279 = vmatpush3.bf16.msra.mxu0 %v2402_v33  ;;  %v2404_v35 = vld [vmem:[%s3132_s6 + $0x28] sm:$0xff]   ;;  %v2405_v25 = vld [vmem:[%s3132_s6 + $0x20] sm:$0xff]   ;;  %v2407_v37 = vld [vmem:[%s3132_s6 + $0x10] sm:$0xff]  }
 0x163   :  { %v572_v48 = vshll.u32 %v494_v42, 16  ;;  %v558_v55 = vor.u32 %v557_v46, %v553_v38  ;;  %v596_v2 = vshrl.u32 %v494_v42, 16  ;;  %v586_v15 = vrot.slane %v584_v1, 1  ;;  %2280 = vmatprep.subr.bf16.mxu0 %v2476_v29  ;;  %v2408_v39 = vld [vmem:[%s3132_s6 + $0x8] sm:$0xff]  }
 0x164   :  { %v560_v49 = vshll.u32 %v493_v45, 16  ;;  %v588_v7 = vshrl.u32 %v493_v45, 16  ;;  %v608_v27 = vshll.u32 %v498_v24, 16  ;;  %v604_v28 = vshrl.u32 %v495_v52, 16  ;;  %v2416_v33 = vld [vmem:[%s3133_s4 + $0x8] sm:$0xff]  }
 0x165   :  { %v574_v51 = vrot.slane %v572_v48, 1  ;;  %v587_v19 = vsel %vm237_vm10, %v582_v14, %v586_v15 }
 0x166   :  { %v562_v56 = vrot.slane %v560_v49, 1  ;;  %v606_v30 = vor.u32 %v604_v28, %v586_v15  ;;  %v610_v31 = vrot.slane %v608_v27, 1  ;;  %2281 = vmatpush3.bf16.msra.mxu0 %v2403_v34  ;;  %v2041_v49 = vld [vmem:[%s3131_s1 + $0x1] ss:$0 sm:$0xff]  ;;  %v2411_v27 = vld [vmem:[%s3133_s4 + $0x30] sm:$0xff]   ;;  %v2412_v28 = vld [vmem:[%s3133_s4 + $0x28] sm:$0xff]  }
 0x167   :  { %v575_v57 = vsel %vm237_vm10, %v570_v50, %v574_v51  ;;  %v488_v58 = vld [vmem:[#allocation3 + $0x68] sm:$0x1]  ;;  %v598_v10 = vor.u32 %v596_v2, %v574_v51  ;;  %2282 = vmatprep.subr.bf16.mxu0 %v2476_v29  ;;  %v2417_v34 = vld [vmem:[%s3133_s4] sm:$0xff]  }
 0x168   :  { %794 = vmatprep.mubr.bf16.mxu1 %v575_v57  ;;  %v563_v60 = vsel %vm237_vm10, %v558_v55, %v562_v56  ;;  %v497_v61 = vpack.c.bf16 %v488_v58, %v488_v58  ;;  %v487_v62 = vld [vmem:[#allocation3 + $0x60] sm:$0x1]  ;;  %v590_v12 = vor.u32 %v588_v7, %v562_v56  ;;  %v611_v32 = vsel %vm237_vm10, %v606_v30, %v610_v31  ;;  %v2413_v30 = vld [vmem:[%s3133_s4 + $0x20] sm:$0xff]   ;;  %v2414_v31 = vld [vmem:[%s3133_s4 + $0x18] sm:$0xff]  }
 0x169   :  { %795 = vmatmul.mubr.bf16.vlgmr.msra.gmra.mxu1 %v563_v60  ;;  %v496_v63 = vpack.c.bf16 %v487_v62, %v487_v62 }
 0x16a   :  { %2259 = vmatpush3.bf16.msra.mxu1 %v2736_v54  ;;  %v600_v3 = vshll.u32 %v497_v61, 16  ;;  %2283 = vmatpush3.bf16.msra.mxu0 %v2404_v35  ;;  %v1005_v35 = vand.u32 7, %v2549_v5  ;;  %v1012_v5 = vand.u32 7, %v2568_v13 }
 0x16b   :  { %2260 = vmatprep.subr.bf16.mxu1 %v2395_v59  ;;  %v592_v8 = vshll.u32 %v496_v63, 16  ;;  %2284 = vmatprep.subr.bf16.mxu0 %v2476_v29 }
 0x16c   :  { %v602_v11 = vrot.slane %v600_v3, 1  ;;  %vm2860_vm2 = vcmp.eq.s32.totalorder %v1005_v35, 7 }
 0x16d   :  { %v594_v18 = vrot.slane %v592_v8, 1 }
 0x16e   :  { %v603_v16 = vsel %vm237_vm10, %v598_v10, %v602_v11  ;;  %2261 = vmatpush3.bf16.msra.mxu1 %v2395_v59  ;;  %2285 = vmatpush3.bf16.msra.mxu0 %v2405_v25  ;;  %v2409_v11 = vld [vmem:[%s3132_s6] sm:$0xff]   ;;  %v2418_v25 = vld [vmem:[%s3133_s4 + $0x58] sm:$0xff]  }
 0x16f   :  { %802 = vmatprep.mubr.bf16.mxu1 %v603_v16  ;;  %2262 = vmatprep.subr.bf16.mxu1 %v2396_v6  ;;  %v595_v54 = vsel %vm237_vm10, %v590_v12, %v594_v18 }
 0x170   :  { %2286 = vmatprep.subr.bf16.mxu0 %v2476_v29 }
 0x171   :  { %803 = vmatmul.mubr.bf16.gmra.mxu1 %v595_v54 }
 0x172   :  { %2263 = vmatpush3.bf16.msra.mxu1 %v2396_v6  ;;  %2274 = vmatprep.mubr.bf16.mxu1 %v587_v19 }
 0x173   :  { %2264 = vmatprep.subr.bf16.mxu1 %v2397_v17  ;;  %2287 = vmatpush3.bf16.msra.mxu0 %v2406_v36  ;;  %v2419_v36 = vld [vmem:[%s3133_s4 + $0x50] sm:$0xff]  }
 0x174   :  { %2288 = vmatprep.subr.bf16.mxu0 %v2476_v29 }
 0x176   :  { %2265 = vmatpush3.bf16.msra.mxu1 %v2397_v17 }
 0x177   :  { %2266 = vmatprep.subr.bf16.mxu1 %v2398_v20  ;;  %2289 = vmatpush3.bf16.msra.mxu0 %v2407_v37 }
 0x178   :  { %2290 = vmatprep.subr.bf16.mxu0 %v2476_v29 }
 0x17a   :  { %2267 = vmatpush3.bf16.msra.mxu1 %v2398_v20 }
 0x17b   :  { %2268 = vmatprep.subr.bf16.mxu1 %v2399_v21  ;;  %2291 = vmatpush3.bf16.msra.mxu0 %v2408_v39 }
 0x17c   :  { %2292 = vmatprep.subr.bf16.mxu0 %v2476_v29 }
 0x17e   :  { %2269 = vmatpush3.bf16.msra.mxu1 %v2399_v21 }
 0x17f   :  { %2270 = vmatprep.subr.bf16.mxu1 %v2400_v23  ;;  %2293 = vmatpush3.bf16.msra.mxu0 %v2409_v11 }
 0x182   :  { %2271 = vmatpush3.bf16.msra.mxu1 %v2400_v23 }
 0x183   :  { %2272 = vmatprep.subr.bf16.mxu1 %v2401_v26 }
 0x186   :  { %2273 = vmatpush3.bf16.msra.mxu1 %v2401_v26  ;;  %v2410_v26 = vld [vmem:[%s3133_s4 + $0x38] sm:$0xff]  }
 0x187   :  { %1212 = vmatprep.subr.bf16.mxu1 %v2474_v4 }
 0x189   :  { %2275 = vmatmul.mubr.bf16.vlgmr.msra.gmra.mxu1 %v611_v32  ;;  %v2415_v32 = vld [vmem:[%s3133_s4 + $0x10] sm:$0xff]  }
 0x18a   :  { %1213 = vmatpush1.bf16.msra.mxu1 %v2410_v26  ;;  %v2426_v26 = vld [vmem:[%s3134_s5 + $0x68] sm:$0xff]  }
 0x18b   :  { %1214 = vmatprep.subr.bf16.mxu1 %v2474_v4 }
 0x18e   :  { %1215 = vmatpush1.bf16.msra.mxu1 %v2411_v27  ;;  %v2427_v27 = vld [vmem:[%s3134_s5 + $0x28] sm:$0xff]  }
 0x18f   :  { %1216 = vmatprep.subr.bf16.mxu1 %v2474_v4 }
 0x192   :  { %1217 = vmatpush1.bf16.msra.mxu1 %v2412_v28  ;;  %v2428_v28 = vld [vmem:[%s3134_s5 + $0x60] sm:$0xff]  }
 0x193   :  { %1218 = vmatprep.subr.bf16.mxu1 %v2474_v4 }
 0x196   :  { %1219 = vmatpush1.bf16.msra.mxu1 %v2413_v30  ;;  %v2429_v30 = vld [vmem:[%s3134_s5 + $0x20] sm:$0xff]  }
 0x197   :  { %1220 = vmatprep.subr.bf16.mxu1 %v2474_v4 }
 0x19a   :  { %1221 = vmatpush1.bf16.msra.mxu1 %v2414_v31  ;;  %v2430_v31 = vld [vmem:[%s3134_s5 + $0x58] sm:$0xff]  }
 0x19b   :  { %1222 = vmatprep.subr.bf16.mxu1 %v2474_v4 }
 0x19e   :  { %1223 = vmatpush1.bf16.msra.mxu1 %v2415_v32  ;;  %v2431_v32 = vld [vmem:[%s3134_s5 + $0x18] sm:$0xff]  }
 0x19f   :  { %1224 = vmatprep.subr.bf16.mxu1 %v2474_v4 }
 0x1a2   :  { %1225 = vmatpush1.bf16.msra.mxu1 %v2416_v33  ;;  %v2432_v33 = vld [vmem:[%s3134_s5 + $0x50] sm:$0xff]  }
 0x1a3   :  { %1226 = vmatprep.subr.bf16.mxu1 %v2474_v4 }
 0x1a6   :  { %1227 = vmatpush1.bf16.msra.mxu1 %v2417_v34  ;;  %v2433_v34 = vld [vmem:[%s3134_s5 + $0x10] sm:$0xff]  }
 0x1a7   :  { %1236 = vmatprep.subr.bf16.mxu1 %v2474_v4 }
 0x1aa   :  { %1237 = vmatpush2.bf16.msra.mxu1 %v2418_v25  ;;  %v2435_v25 = vld [vmem:[%s3134_s5 + $0x8] sm:$0xff]  }
 0x1ab   :  { %1238 = vmatprep.subr.bf16.mxu1 %v2474_v4 }
 0x1ae   :  { %1239 = vmatpush2.bf16.msra.mxu1 %v2419_v36  ;;  %v2436_v36 = vld [vmem:[%s3134_s5 + $0x40] sm:$0xff]  }
 0x1af   :  { %1240 = vmatprep.subr.bf16.mxu1 %v2474_v4 }
 0x229   :  { %v2160_v40 = vpop.f32.mrf.mxu1 }
 0x22b   :  { %v2161_v41 = vpop.f32.mrf.mxu1 }
 0x22c   :  { %v2162_v38 = vadd.f32 %v2161_v41, %v2160_v40 }
 0x22d   :  { %v2163_v42 = vpop.f32.mrf.mxu1 }
 0x22e   :  { %v797_v56 = vadd.f32 %v2162_v38, %v2041_v49 }
 0x22f   :  { %v2164_v43 = vpop.f32.mrf.mxu1 }
 0x230   :  { %v2165_v52 = vadd.f32 %v2164_v43, %v2163_v42 }
 0x231   :  { %v2166_v44 = vpop.f32.mrf.mxu1 }
 0x232   :  { %v800_v62 = vadd.f32 %v2165_v52, %v2041_v49  ;;  %v2421_v52 = vld [vmem:[%s3133_s4 + $0x40] sm:$0xff]  }
 0x233   :  { %v2167_v45 = vpop.f32.mrf.mxu1 }
 0x234   :  { %v2168_v47 = vadd.f32 %v2167_v45, %v2166_v44  ;;  %v2420_v44 = vld [vmem:[%s3133_s4 + $0x48] sm:$0xff]  }
 0x235   :  { %v2169_v46 = vpop.f32.mrf.mxu1  ;;  %1241 = vmatpush2.bf16.msra.mxu1 %v2420_v44 }
 0x236   :  { %v805_v51 = vadd.f32 %v2168_v47, %v2041_v49  ;;  %1242 = vmatprep.subr.bf16.mxu1 %v2474_v4 }
 0x237   :  { %v2170_v48 = vpop.f32.mrf.mxu1 }
 0x238   :  { %v2171_v50 = vadd.f32 %v2170_v48, %v2169_v46 }
 0x239   :  { %1243 = vmatpush2.bf16.msra.mxu1 %v2421_v52 }
 0x23a   :  { %v808_v60 = vadd.f32 %v2171_v50, %v2041_v49  ;;  %2318 = vmatprep.subr.bf16.mxu1 %v2476_v29 }
 0x249   :  { %v2276_v53 = vpop.f32.mrf.mxu1 }
 0x24a   :  { %v854_v55 = vadd.f32 %v2276_v53, %v805_v51  ;;  %v1078_v51 = vld [vmem:[#allocation5 + $0x28] sm:$0x1] }
 0x24b   :  { %v845_v57 = vpop.f32.mrf.mxu1 }
 0x24c   :  { %vm862_vm3 = vcmp.ge.f32.partialorder %v854_v55, 0.0  ;;  %v866_v58 = vmul.f32 0.01, %v854_v55  ;;  %v846_v59 = vadd.f32 %v845_v57, %v797_v56  ;;  %v1082_v57 = vpack.c.bf16 %v1078_v51, %v1078_v51 }
 0x24d   :  { %v2277_v61 = vpop.f32.mrf.mxu1 }
 0x24e   :  { %v870_v63 = vsel %vm862_vm3, %v854_v55, %v866_v58  ;;  %vm860_vm4 = vcmp.ge.f32.partialorder %v846_v59, 0.0  ;;  %v864_v0 = vmul.f32 0.01, %v846_v59  ;;  %v857_v1 = vadd.f32 %v2277_v61, %v808_v60 }
 0x24f   :  { %874 = vst [vmem:[#allocation4 + $0x10] sm:$0xff] %v870_v63  ;;  %v848_v2 = vpop.f32.mrf.mxu1  ;;  %vm2864_vm3 = vcmp.eq.s32.totalorder %v1005_v35, 0  ;;  %v1132_v60 = vshll.u32 %v1082_v57, 16  ;;  %v2423_v63 = vld [vmem:[%s3134_s5 + $0x38] sm:$0xff]   ;;  %v2434_v35 = vld [vmem:[%s3134_s5 + $0x48] sm:$0xff]  }
 0x250   :  { %v868_v3 = vsel %vm860_vm4, %v846_v59, %v864_v0  ;;  %vm863_vm8 = vcmp.ge.f32.partialorder %v857_v1, 0.0  ;;  %v867_v6 = vmul.f32 0.01, %v857_v1  ;;  %v849_v7 = vadd.f32 %v848_v2, %v800_v62  ;;  %v2422_v62 = vld [vmem:[%s3134_s5 + $0x78] sm:$0xff]  }
 0x251   :  { %872 = vst [vmem:[#allocation4] sm:$0xff] %v868_v3  ;;  %vm2878_vm4 = vcmp.eq.s32.totalorder %v1012_v5, 7  ;;  %2191 = vmatprep.subr.bf16.mxu0 %v2422_v62 }
 0x252   :  { %v871_v8 = vsel %vm863_vm8, %v857_v1, %v867_v6  ;;  %vm861_vm15 = vcmp.ge.f32.partialorder %v849_v7, 0.0  ;;  %v865_v9 = vmul.f32 0.01, %v849_v7  ;;  %vm2882_vm8 = vcmp.eq.s32.totalorder %v1012_v5, 0  ;;  %v2437_v5 = vld [vmem:[%s3134_s5] sm:$0xff]  }
 0x253   :  { %875 = vst [vmem:[#allocation4 + $0x18] sm:$0xff] %v871_v8  ;;  %v1134_v1 = vrot.slane %v1132_v60, 1 }
 0x254   :  { %v869_v10 = vsel %vm861_vm15, %v849_v7, %v865_v9 }
 0x255   :  { %873 = vst [vmem:[#allocation4 + $0x8] sm:$0xff] %v869_v10 }
 0x25a   :  { %v878_v12 = vld [vmem:[#allocation4 + $0x10] ss:$2 sm:$0xff]  ;;  %v882_v18 = vld [vmem:[#allocation4 + $0x11] ss:$2 sm:$0xff] }
 0x25b   :  { %v884_v54 = vmax.f32 %v878_v12, %v882_v18 }
 0x25c   :  { %v876_v14 = vld [vmem:[#allocation4] ss:$2 sm:$0xff]  ;;  %v880_v15 = vld [vmem:[#allocation4 + $0x1] ss:$2 sm:$0xff] }
 0x25d   :  { %v883_v16 = vmax.f32 %v876_v14, %v880_v15 }
 0x25f   :  { %v2356_v17 = vpack.i.bf16 %v884_v54, %v883_v16 }
 0x261   :  { %2357 = vrot.lane.b32.xlu1 %v2356_v17, %s2478_s28 }
 0x2d3   :  { %v2358_v19 = vpop.permute.xlu1 %2357 }
 0x2d4   :  { %v2360_v20 = vunpack.i.h.bf16 %v2358_v19  ;;  %v2359_v21 = vunpack.i.l.bf16 %v2358_v19 }
 0x2d6   :  { %v894_v22 = vmax.f32 %v884_v54, %v2360_v20  ;;  %v893_v23 = vmax.f32 %v883_v16, %v2359_v21 }
 0x2d8   :  { %v895_v24 = vpack.c.bf16 %v894_v22, %v893_v23  ;;  %v2424_v23 = vld [vmem:[%s3134_s5 + $0x70] sm:$0xff]  }
 0x2da   :  { %2295 = vmatmul.mubr.bf16.vlgmr.msra.gmra.mxu0 %v895_v24  ;;  %v2425_v24 = vld [vmem:[%s3134_s5 + $0x30] sm:$0xff]  }
 0x2db   :  { %2192 = vmatpush3.bf16.msra.mxu0 %v2423_v63 }
 0x2dc   :  { %2193 = vmatprep.subr.bf16.mxu0 %v2424_v23 }
 0x2df   :  { %2194 = vmatpush3.bf16.msra.mxu0 %v2425_v24  ;;  %v1297_v24 = vld [vmem:[#allocation6 + $0x40] sm:$0x1] }
 0x2e0   :  { %2195 = vmatprep.subr.bf16.mxu0 %v2426_v26  ;;  %v2443_v26 = vld [vmem:[%s3134_s5 + $0x90] sm:$0xff]  }
 0x2e3   :  { %2196 = vmatpush3.bf16.msra.mxu0 %v2427_v27  ;;  %v1303_v27 = vpack.c.bf16 %v1297_v24, %v1297_v24 }
 0x2e4   :  { %2197 = vmatprep.subr.bf16.mxu0 %v2428_v28 }
 0x2e7   :  { %2198 = vmatpush3.bf16.msra.mxu0 %v2429_v30  ;;  %v2444_v30 = vld [vmem:[%s3134_s5 + $0x88] sm:$0xff]  }
 0x2e8   :  { %2199 = vmatprep.subr.bf16.mxu0 %v2430_v31 }
 0x2eb   :  { %2200 = vmatpush3.bf16.msra.mxu0 %v2431_v32  ;;  %v1389_v32 = vshll.u32 %v1303_v27, 16 }
 0x2ec   :  { %2201 = vmatprep.subr.bf16.mxu0 %v2432_v33  ;;  %v2445_v33 = vld [vmem:[%s3134_s5 + $0x80] sm:$0xff]  }
 0x2ef   :  { %2202 = vmatpush3.bf16.msra.mxu0 %v2433_v34 }
 0x2f0   :  { %2203 = vmatprep.subr.bf16.mxu0 %v2434_v35 }
 0x2f3   :  { %2204 = vmatpush3.bf16.msra.mxu0 %v2435_v25  ;;  %v1391_v25 = vrot.slane %v1389_v32, 1 }
 0x2f4   :  { %2205 = vmatprep.subr.bf16.mxu0 %v2436_v36 }
 0x2f7   :  { %2206 = vmatpush3.bf16.msra.mxu0 %v2437_v5  ;;  %v2446_v5 = vld [vmem:[%s3135_s7 + $0x38] sm:$0xff]  }
 0x2f8   :  { %2298 = vmatprep.subr.bf16.mxu0 %v2476_v29 }
 0x39a   :  { %v994_v40 = vpop.f32.mrf.mxu0 }
 0x39b   :  { %v1031_v41 = vsel %vm2860_vm2, 0.0, %v994_v40  ;;  %v1039_v42 = vsel %vm2864_vm3, 0.0, %v994_v40  ;;  %v1054_v43 = vrot.slane %v994_v40, 7  ;;  %v2074_v40 = vld [vmem:[%s3131_s1 + $0x2] ss:$0 sm:$0xff] }
 0x39c   :  { %v1043_v45 = vrot.slane %v1031_v41, 6  ;;  %1069 = vst.msk [vmem:[#allocation5 + $0x8] sm:$0xff] %vm144_vm0, %v1039_v42  ;;  %v2296_v46 = vpop.f32.mrf.mxu0 }
 0x39d   :  { %1057 = vrot.lane.b32.xlu0 %v1054_v43, %s2475_s23 }
 0x39e   :  { %1049 = vst.msk [vmem:[#allocation5] sm:$0xfc] %vm142_vm5, %v1043_v45  ;;  %v997_v48 = vpop.f32.mrf.mxu0 }
 0x39f   :  { %v1032_v38 = vsel %vm2878_vm4, 0.0, %v997_v48  ;;  %v1040_v49 = vsel %vm2882_vm8, 0.0, %v997_v48  ;;  %v1055_v50 = vrot.slane %v997_v48, 7 }
 0x3a0   :  { %v1044_v53 = vrot.slane %v1032_v38, 6  ;;  %1070 = vst.msk [vmem:[#allocation5 + $0x18] sm:$0xff] %vm144_vm0, %v1040_v49  ;;  %v2297_v55 = vpop.f32.mrf.mxu0 }
 0x3a1   :  { %1061 = vrot.lane.b32.xlu0 %v1055_v50, %s2475_s23  ;;  %v1056_v56 = vsel %vm154_vm1, %v1054_v43, %v1055_v50 }
 0x3a2   :  { %1051 = vst.msk [vmem:[#allocation5 + $0x20] sm:$0x3] %vm148_vm9, %v1044_v53  ;;  %1059 = vrot.lane.b32.xlu1 %v1056_v56, %s2475_s23  ;;  %v1045_v58 = vsel %vm129_vm7, %v1043_v45, %v1044_v53 }
 0x3a3   :  { %1050 = vst.msk [vmem:[#allocation5 + $0x10] sm:$0xff] %vm144_vm0, %v1045_v58  ;;  %v1074_v59 = vld [vmem:[#allocation5 + $0x8] sm:$0xfe] }
 0x3a7   :  { %v1076_v61 = vld [vmem:[#allocation5 + $0x18] sm:$0xff] }
 0x3a8   :  { %v1080_v4 = vpack.c.bf16 %v1076_v61, %v1074_v59 }
 0x3aa   :  { %v1127_v0 = vshll.u32 %v1080_v4, 16  ;;  %v1125_v2 = vshrl.u32 %v1080_v4, 16 }
 0x3ac   :  { %v1129_v3 = vrot.slane %v1127_v0, 1 }
 0x3ae   :  { %v1130_v6 = vor.u32 %v1129_v3, %v1125_v2 }
 0x3b0   :  { %v1135_v7 = vsel %vm237_vm10, %v1130_v6, %v1134_v1 }
 0x3b1   :  { %2087 = vmatprep.mubr.msk.bf16.mxu1 %vm144_vm0, %v1135_v7 }
 0x40f   :  { %v1058_v8 = vpop.permute.xlu0 %1057 }
 0x410   :  { %1066 = vst.msk [vmem:[#allocation5] sm:$0xfe] %vm177_vm11, %v1058_v8 }
 0x411   :  { %1071 = vst.msk [vmem:[#allocation5 + $0x1] sm:$0x1] %vm189_vm6, %v2476_v29 }
 0x413   :  { %v1062_v9 = vpop.permute.xlu0 %1061 }
 0x414   :  { %1068 = vst.msk [vmem:[#allocation5 + $0x20] sm:$0x1] %vm183_vm13, %v1062_v9  ;;  %v1060_v10 = vpop.permute.xlu1 %1059 }
 0x415   :  { %1067 = vst.msk [vmem:[#allocation5 + $0x10] sm:$0xff] %vm179_vm12, %v1060_v10 }
 0x418   :  { %v1073_v12 = vld [vmem:[#allocation5] sm:$0xfe] }
 0x41b   :  { %v1077_v11 = vld [vmem:[#allocation5 + $0x20] sm:$0x1] }
 0x41c   :  { %v1075_v18 = vld [vmem:[#allocation5 + $0x10] sm:$0xff]  ;;  %v1081_v14 = vpack.c.bf16 %v1077_v11, %v1077_v11 }
 0x41d   :  { %v1079_v15 = vpack.c.bf16 %v1075_v18, %v1073_v12 }
 0x41e   :  { %v1120_v54 = vshll.u32 %v1081_v14, 16 }
 0x41f   :  { %v1115_v16 = vshll.u32 %v1079_v15, 16  ;;  %v1113_v17 = vshrl.u32 %v1079_v15, 16  ;;  %v2438_v15 = vld [vmem:[%s3134_s5 + $0xb8] sm:$0xff]  }
 0x420   :  { %v1122_v21 = vrot.slane %v1120_v54, 1 }
 0x421   :  { %v1117_v19 = vrot.slane %v1115_v16, 1 }
 0x423   :  { %v1118_v20 = vor.u32 %v1117_v19, %v1113_v17  ;;  %v2439_v17 = vld [vmem:[%s3134_s5 + $0xb0] sm:$0xff]   ;;  %v2440_v19 = vld [vmem:[%s3134_s5 + $0xa8] sm:$0xff]  }
 0x425   :  { %v1123_v22 = vsel %vm237_vm10, %v1118_v20, %v1122_v21  ;;  %v2441_v20 = vld [vmem:[%s3134_s5 + $0xa0] sm:$0xff]  }
 0x426   :  { %1245 = vmatmul.mubr.bf16.vlgmr.msra.gmra.mxu1 %v1123_v22  ;;  %v2442_v22 = vld [vmem:[%s3134_s5 + $0x98] sm:$0xff]  }
 0x427   :  { %2334 = vmatprep.mubr.msk.bf16.mxu1 %vm2477_vm14, %v2476_v29  ;;  %2319 = vmatpush3.bf16.msra.mxu1 %v2446_v5 }
 0x428   :  { %2320 = vmatprep.subr.bf16.mxu1 %v2476_v29 }
 0x4e6   :  { %v1246_v41 = vpop.f32.mrf.mxu1 }
 0x4e7   :  { %v1247_v42 = vadd.f32 %v2074_v40, %v1246_v41  ;;  %v2448_v41 = vld [vmem:[%s3135_s7 + $0x28] sm:$0xff]  }
 0x4e8   :  { %v1248_v43 = vpop.f32.mrf.mxu1 }
 0x4e9   :  { %vm1253_vm5 = vcmp.ge.f32.partialorder %v1247_v42, 0.0  ;;  %v1255_v44 = vmul.f32 0.01, %v1247_v42  ;;  %v2450_v43 = vld [vmem:[%s3135_s7 + $0x18] sm:$0xff]  }
 0x4ea   :  { %v1249_v45 = vpop.f32.mrf.mxu1 }
 0x4eb   :  { %v1257_v46 = vsel %vm1253_vm5, %v1247_v42, %v1255_v44  ;;  %v1250_v48 = vadd.f32 %v2074_v40, %v1249_v45  ;;  %v2447_v40 = vld [vmem:[%s3135_s7 + $0x30] sm:$0xff]   ;;  %v2449_v42 = vld [vmem:[%s3135_s7 + $0x20] sm:$0xff]   ;;  %v2452_v45 = vld [vmem:[%s3135_s7 + $0x8] sm:$0xff]  }
 0x4ec   :  { %v1259_v38 = vsel %vm2860_vm2, 0.0, %v1257_v46  ;;  %v1261_v49 = vsel %vm2864_vm3, 0.0, %v1257_v46  ;;  %v1276_v50 = vrot.slane %v1257_v46, 7  ;;  %v1251_v51 = vpop.f32.mrf.mxu1  ;;  %2321 = vmatpush3.bf16.msra.mxu1 %v2447_v40  ;;  %v2451_v44 = vld [vmem:[%s3135_s7 + $0x10] sm:$0xff]  }
 0x4ed   :  { %v1265_v52 = vrot.slane %v1259_v38, 6  ;;  %1285 = vst [vmem:[#allocation6 + $0x10] sm:$0xff] %v1261_v49  ;;  %vm1254_vm6 = vcmp.ge.f32.partialorder %v1250_v48, 0.0  ;;  %v1256_v53 = vmul.f32 0.01, %v1250_v48  ;;  %2322 = vmatprep.subr.bf16.mxu1 %v2476_v29 }
 0x4ee   :  { %1282 = vst [vmem:[#allocation6 + $0x8] sm:$0xfe] %v1276_v50  ;;  %v2088_v51 = vld [vmem:[%s3131_s1 + $0x3] ss:$0 sm:$0xff] }
 0x4ef   :  { %1271 = vst [vmem:[#allocation6] sm:$0xfc] %v1265_v52  ;;  %v1258_v55 = vsel %vm1254_vm6, %v1250_v48, %v1256_v53 }
 0x4f0   :  { %v1260_v56 = vsel %vm2878_vm4, 0.0, %v1258_v55  ;;  %v1262_v57 = vsel %vm2882_vm8, 0.0, %v1258_v55  ;;  %v1277_v37 = vrot.slane %v1258_v55, 7  ;;  %2323 = vmatpush3.bf16.msra.mxu1 %v2448_v41 }
 0x4f1   :  { %v1266_v58 = vrot.slane %v1260_v56, 6  ;;  %2324 = vmatprep.subr.bf16.mxu1 %v2476_v29 }
 0x4f2   :  { %v1278_v39 = vsel %vm154_vm1, %v1276_v50, %v1277_v37  ;;  %1284 = vst [vmem:[#allocation6 + $0x38] sm:$0x1] %v1277_v37 }
 0x4f3   :  { %v1267_v59 = vsel %vm129_vm7, %v1265_v52, %v1266_v58  ;;  %1273 = vst [vmem:[#allocation6 + $0x30] sm:$0x3] %v1266_v58 }
 0x4f4   :  { %v1291_v21 = vld [vmem:[#allocation6 + $0x10] sm:$0xfe]  ;;  %2325 = vmatpush3.bf16.msra.mxu1 %v2449_v42  ;;  %v2471_v42 = vld [vmem:[%s3137_s9 + $0x10] sm:$0xff]  }
 0x4f5   :  { %v1290_v60 = vld [vmem:[#allocation6 + $0x8] sm:$0xfe]  ;;  %v1300_v23 = vpack.c.bf16 %v1262_v57, %v1291_v21  ;;  %2326 = vmatprep.subr.bf16.mxu1 %v2476_v29 }
 0x4f6   :  { %v1299_v61 = vpack.c.bf16 %v1278_v39, %v1290_v60  ;;  %v1289_v4 = vld [vmem:[#allocation6] sm:$0xfe] }
 0x4f7   :  { %v1298_v62 = vpack.c.bf16 %v1267_v59, %v1289_v4  ;;  %v1384_v28 = vshll.u32 %v1300_v23, 16  ;;  %v1382_v34 = vshrl.u32 %v1300_v23, 16  ;;  %v2453_v4 = vld [vmem:[%s3135_s7] sm:$0xff]  }
 0x4f8   :  { %v1372_v63 = vshll.u32 %v1299_v61, 16  ;;  %v1370_v7 = vshrl.u32 %v1299_v61, 16  ;;  %2327 = vmatpush3.bf16.msra.mxu1 %v2450_v43  ;;  %v2472_v43 = vld [vmem:[%s3137_s9 + $0x8] sm:$0xff]  }
 0x4f9   :  { %v1296_v0 = vld [vmem:[#allocation6 + $0x38] sm:$0x1]  ;;  %v1360_v1 = vshll.u32 %v1298_v62, 16  ;;  %v1358_v9 = vshrl.u32 %v1298_v62, 16  ;;  %v1386_v31 = vrot.slane %v1384_v28, 1  ;;  %2328 = vmatprep.subr.bf16.mxu1 %v2476_v29 }
 0x4fa   :  { %v1302_v13 = vpack.c.bf16 %v1296_v0, %v1296_v0  ;;  %v1374_v2 = vrot.slane %v1372_v63, 1  ;;  %v1295_v3 = vld [vmem:[#allocation6 + $0x30] sm:$0x1] }
 0x4fb   :  { %v1301_v47 = vpack.c.bf16 %v1295_v3, %v1295_v3  ;;  %v1362_v6 = vrot.slane %v1360_v1, 1  ;;  %v1387_v35 = vor.u32 %v1386_v31, %v1382_v34 }
 0x4fc   :  { %v1377_v8 = vshll.u32 %v1302_v13, 16  ;;  %v1375_v11 = vor.u32 %v1374_v2, %v1370_v7  ;;  %2329 = vmatpush3.bf16.msra.mxu1 %v2451_v44  ;;  %v2455_v7 = vld [vmem:[%s3136_s8 + $0x38] sm:$0xff]   ;;  %v2473_v44 = vld [vmem:[%s3137_s9] sm:$0xff]  }
 0x4fd   :  { %v1365_v10 = vshll.u32 %v1301_v47, 16  ;;  %v1363_v18 = vor.u32 %v1362_v6, %v1358_v9  ;;  %v1392_v36 = vsel %vm237_vm10, %v1387_v35, %v1391_v25  ;;  %2330 = vmatprep.subr.bf16.mxu1 %v2476_v29  ;;  %v2454_v6 = vld [vmem:[%s3136_s8 + $0x78] sm:$0xff]   ;;  %v2457_v9 = vld [vmem:[%s3136_s8 + $0x30] sm:$0xff]  }
 0x4fe   :  { %v1379_v12 = vrot.slane %v1377_v8, 1  ;;  %v2456_v8 = vld [vmem:[%s3136_s8 + $0x70] sm:$0xff]  }
 0x4ff   :  { %v1367_v14 = vrot.slane %v1365_v10, 1  ;;  %v2458_v10 = vld [vmem:[%s3136_s8 + $0x68] sm:$0xff]  }
 0x500   :  { %v1380_v16 = vsel %vm237_vm10, %v1375_v11, %v1379_v12  ;;  %2331 = vmatpush3.bf16.msra.mxu1 %v2452_v45  ;;  %v2459_v11 = vld [vmem:[%s3136_s8 + $0x28] sm:$0xff]   ;;  %v2460_v12 = vld [vmem:[%s3136_s8 + $0x60] sm:$0xff]  }
 0x501   :  { %1572 = vmatprep.mubr.bf16.mxu0 %v1380_v16  ;;  %v1368_v54 = vsel %vm237_vm10, %v1363_v18, %v1367_v14  ;;  %2332 = vmatprep.subr.bf16.mxu1 %v2476_v29  ;;  %v2461_v18 = vld [vmem:[%s3136_s8 + $0x20] sm:$0xff]   ;;  %v2462_v14 = vld [vmem:[%s3136_s8 + $0x58] sm:$0xff]   ;;  %v2464_v16 = vld [vmem:[%s3136_s8 + $0x50] sm:$0xff]  }
 0x502   :  { %1573 = vmatmul.mubr.bf16.vlgmr.msra.gmra.mxu0 %v1368_v54  ;;  %v2465_v54 = vld [vmem:[%s3136_s8 + $0x10] sm:$0xff]  }
 0x503   :  { %2299 = vmatpush3.bf16.msra.mxu0 %v2438_v15  ;;  %2314 = vmatprep.mubr.msk.bf16.mxu0 %vm2477_vm14, %v2476_v29  ;;  %v2463_v15 = vld [vmem:[%s3136_s8 + $0x18] sm:$0xff]  }
 0x504   :  { %2300 = vmatprep.subr.bf16.mxu0 %v2476_v29  ;;  %2333 = vmatpush3.bf16.msra.mxu1 %v2453_v4 }
 0x505   :  { %2338 = vmatprep.subr.bf16.mxu1 %v2476_v29 }
 0x507   :  { %2301 = vmatpush3.bf16.msra.mxu0 %v2439_v17  ;;  %v2466_v17 = vld [vmem:[%s3136_s8 + $0x48] sm:$0xff]  }
 0x508   :  { %2302 = vmatprep.subr.bf16.mxu0 %v2476_v29 }
 0x50b   :  { %2303 = vmatpush3.bf16.msra.mxu0 %v2440_v19  ;;  %v2467_v19 = vld [vmem:[%s3136_s8 + $0x8] sm:$0xff]  }
 0x50c   :  { %2304 = vmatprep.subr.bf16.mxu0 %v2476_v29 }
 0x50f   :  { %2305 = vmatpush3.bf16.msra.mxu0 %v2441_v20  ;;  %v2468_v20 = vld [vmem:[%s3136_s8 + $0x40] sm:$0xff]  }
 0x510   :  { %2306 = vmatprep.subr.bf16.mxu0 %v2476_v29 }
 0x513   :  { %2307 = vmatpush3.bf16.msra.mxu0 %v2442_v22  ;;  %v2469_v22 = vld [vmem:[%s3136_s8] sm:$0xff]  }
 0x514   :  { %2308 = vmatprep.subr.bf16.mxu0 %v2476_v29 }
 0x517   :  { %2309 = vmatpush3.bf16.msra.mxu0 %v2443_v26  ;;  %v2470_v26 = vld [vmem:[%s3137_s9 + $0x18] sm:$0xff]  }
 0x518   :  { %2310 = vmatprep.subr.bf16.mxu0 %v2476_v29 }
 0x51b   :  { %2311 = vmatpush3.bf16.msra.mxu0 %v2444_v30 }
 0x51c   :  { %2312 = vmatprep.subr.bf16.mxu0 %v2476_v29 }
 0x51f   :  { %2313 = vmatpush3.bf16.msra.mxu0 %v2445_v33 }
 0x520   :  { %2231 = vmatprep.subr.bf16.mxu0 %v2454_v6 }
 0x522   :  { %2315 = vmatmul.mubr.bf16.vlgmr.msra.gmra.mxu0 %v1392_v36 }
 0x523   :  { %2232 = vmatpush3.bf16.msra.mxu0 %v2455_v7 }
 0x524   :  { %2233 = vmatprep.subr.bf16.mxu0 %v2456_v8 }
 0x527   :  { %2234 = vmatpush3.bf16.msra.mxu0 %v2457_v9 }
 0x528   :  { %2235 = vmatprep.subr.bf16.mxu0 %v2458_v10 }
 0x52b   :  { %2236 = vmatpush3.bf16.msra.mxu0 %v2459_v11 }
 0x52c   :  { %2237 = vmatprep.subr.bf16.mxu0 %v2460_v12 }
 0x52f   :  { %2238 = vmatpush3.bf16.msra.mxu0 %v2461_v18 }
 0x530   :  { %2239 = vmatprep.subr.bf16.mxu0 %v2462_v14 }
 0x533   :  { %2240 = vmatpush3.bf16.msra.mxu0 %v2463_v15 }
 0x534   :  { %2241 = vmatprep.subr.bf16.mxu0 %v2464_v16 }
 0x537   :  { %2242 = vmatpush3.bf16.msra.mxu0 %v2465_v54 }
 0x538   :  { %2243 = vmatprep.subr.bf16.mxu0 %v2466_v17 }
 0x53b   :  { %2244 = vmatpush3.bf16.msra.mxu0 %v2467_v19 }
 0x53c   :  { %2245 = vmatprep.subr.bf16.mxu0 %v2468_v20 }
 0x53f   :  { %2246 = vmatpush3.bf16.msra.mxu0 %v2469_v22 }
 0x5c2   :  { %v2207_v46 = vpop.f32.mrf.mxu0 }
 0x5c4   :  { %v2208_v48 = vpop.f32.mrf.mxu0 }
 0x5c5   :  { %v2209_v49 = vadd.f32 %v2208_v48, %v2207_v46  ;;  %v2121_v46 = vld [vmem:[%s3131_s1 + $0x4] ss:$0 sm:$0xff] }
 0x5c6   :  { %v2210_v38 = vpop.f32.mrf.mxu0 }
 0x5c7   :  { %v1575_v53 = vadd.f32 %v2209_v49, %v2088_v51 }
 0x5c8   :  { %v2211_v50 = vpop.f32.mrf.mxu0 }
 0x5c9   :  { %v2212_v52 = vadd.f32 %v2211_v50, %v2210_v38 }
 0x5cb   :  { %v1578_v58 = vadd.f32 %v2212_v52, %v2088_v51 }
 0x5e2   :  { %v1615_v55 = vpop.f32.mrf.mxu0 }
 0x5e3   :  { %v1616_v56 = vadd.f32 %v1615_v55, %v1575_v53 }
 0x5e4   :  { %v2316_v57 = vpop.f32.mrf.mxu0 }
 0x5e5   :  { %vm1622_vm1 = vcmp.ge.f32.partialorder %v1616_v56, 0.0  ;;  %v1624_v37 = vmul.f32 0.01, %v1616_v56 }
 0x5e6   :  { %v1618_v39 = vpop.f32.mrf.mxu0 }
 0x5e7   :  { %v1626_v59 = vsel %vm1622_vm1, %v1616_v56, %v1624_v37  ;;  %v1619_v60 = vadd.f32 %v1618_v39, %v1578_v58 }
 0x5e8   :  { %1628 = vst [vmem:[#allocation7] sm:$0xff] %v1626_v59  ;;  %v2317_v61 = vpop.f32.mrf.mxu0 }
 0x5e9   :  { %vm1623_vm7 = vcmp.ge.f32.partialorder %v1619_v60, 0.0  ;;  %v1625_v62 = vmul.f32 0.01, %v1619_v60 }
 0x5eb   :  { %v1627_v63 = vsel %vm1623_vm7, %v1619_v60, %v1625_v62 }
 0x5ec   :  { %1629 = vst [vmem:[#allocation7 + $0x8] sm:$0xff] %v1627_v63 }
 0x5f3   :  { %v1630_v0 = vld [vmem:[#allocation7] ss:$2 sm:$0xff]  ;;  %v1632_v1 = vld [vmem:[#allocation7 + $0x1] ss:$2 sm:$0xff] }
 0x5f4   :  { %v1633_v13 = vmax.f32 %v1630_v0, %v1632_v1 }
 0x5f6   :  { %1635 = vrot.lane.b32.xlu1 %v1633_v13, %s2479_s25 }
 0x668   :  { %v1636_v2 = vpop.permute.xlu1 %1635 }
 0x669   :  { %v1638_v3 = vmax.f32 %v1633_v13, %v1636_v2 }
 0x66b   :  { %v1639_v47 = vpack.c.bf16 %v1638_v3, %v1638_v3 }
 0x66d   :  { %2335 = vmatmul.mubr.bf16.vlgmr.msra.gmra.mxu1 %v1639_v47 }
 0x66e   :  { %2346 = vmatprep.mubr.msk.bf16.mxu1 %vm2477_vm14, %v2476_v29  ;;  %2339 = vmatpush3.bf16.msra.mxu1 %v2470_v26 }
 0x66f   :  { %2340 = vmatprep.subr.bf16.mxu1 %v2476_v29 }
 0x672   :  { %2341 = vmatpush3.bf16.msra.mxu1 %v2471_v42 }
 0x673   :  { %2342 = vmatprep.subr.bf16.mxu1 %v2476_v29 }
 0x676   :  { %2343 = vmatpush3.bf16.msra.mxu1 %v2472_v43 }
 0x677   :  { %2344 = vmatprep.subr.bf16.mxu1 %v2476_v29  ;;  %v2138_v29 = vld [vmem:[%s3131_s1 + $0x5] ss:$0 sm:$0xff] }
 0x67a   :  { %2345 = vmatpush3.bf16.msra.mxu1 %v2473_v44 }
 0x72d   :  { %v1738_v21 = vpop.f32.mrf.mxu1 }
 0x72e   :  { %1744 = vst.msk [vmem:[#allocation8] sm:$0xff] %vm144_vm0, %v1738_v21 }
 0x72f   :  { %v2336_v23 = vpop.f32.mrf.mxu1 }
 0x731   :  { %v1741_v24 = vpop.f32.mrf.mxu1 }
 0x733   :  { %v2337_v27 = vpop.f32.mrf.mxu1 }
 0x735   :  { %v1747_v28 = vld [vmem:[#allocation8 + $0x1] ss:$4 sm:$0x3]  ;;  %v1751_v30 = vld [vmem:[#allocation8 + $0x3] ss:$4 sm:$0x3] }
 0x736   :  { %v2361_v31 = vpack.i.bf16 %v1747_v28, %v1751_v30  ;;  %v1745_v35 = vld [vmem:[#allocation8] ss:$4 sm:$0x3]  ;;  %v1749_v25 = vld [vmem:[#allocation8 + $0x2] ss:$4 sm:$0x3] }
 0x738   :  { %2362 = vrot.lane.b32.xlu0 %v2361_v31, %s2475_s23 }
 0x7aa   :  { %v2363_v32 = vpop.permute.xlu0 %2362 }
 0x7ab   :  { %v2365_v33 = vunpack.i.h.bf16 %v2363_v32  ;;  %v2364_v34 = vunpack.i.l.bf16 %v2363_v32 }
 0x7ad   :  { %v1760_v36 = vsel %vm144_vm0, %v1745_v35, %v2365_v33  ;;  %v1761_v5 = vsel %vm144_vm0, %v1749_v25, %v2364_v34 }
 0x7ae   :  { %v1762_v40 = vpack.c.bf16 %v1760_v36, %v1760_v36  ;;  %v1763_v41 = vpack.c.bf16 %v1761_v5, %v1761_v5 }
 0x7b0   :  { %1929 = vmatprep.mubr.bf16.mxu0 %v1763_v41 }
 0x7b1   :  { %1930 = vmatmul.mubr.bf16.vlgmr.msra.gmra.mxu0 %v1762_v40 }
 0x871   :  { %v2247_v45 = vpop.f32.mrf.mxu0 }
 0x873   :  { %v2248_v48 = vpop.f32.mrf.mxu0 }
 0x874   :  { %v2249_v38 = vadd.f32 %v2248_v48, %v2247_v45 }
 0x875   :  { %v2250_v49 = vpop.f32.mrf.mxu0 }
 0x876   :  { %v1932_v50 = vadd.f32 %v2249_v38, %v2121_v46 }
 0x877   :  { %v2251_v51 = vpop.f32.mrf.mxu0 }
 0x878   :  { %vm1937_vm10 = vcmp.ge.f32.partialorder %v1932_v50, 0.0  ;;  %v1938_v52 = vmul.f32 0.01, %v1932_v50 }
 0x87a   :  { %v1939_v53 = vsel %vm1937_vm10, %v1932_v50, %v1938_v52 }
 0x87b   :  { %v1940_v55 = vpack.c.bf16 %v1939_v53, %v1939_v53 }
 0x87d   :  { %2347 = vmatmul.mubr.msk.bf16.vlgmr.msra.gmra.mxu1 %vm144_vm0, %v1940_v55 }
 0x93d   :  { %v2015_v56 = vpop.f32.mrf.mxu1 }
 0x93e   :  { %v2016_v57 = vadd.f32 %v2138_v29, %v2015_v56 }
 0x93f   :  { %v2348_v37 = vpop.f32.mrf.mxu1 }
 0x940   :  { %2021 = vst.msk [vmem:[%s3138_s10] sm:$0x3] %vm148_vm9, %v2016_v57 }
 0x941   :  { %v2018_v58 = vpop.f32.mrf.mxu1 }
 0x943   :  { %v2349_v39 = vpop.f32.mrf.mxu1 }

</bundles_post_ra>
